<compile_context>
chip_gen: v5e
topology: v5e:2x2
jax: 0.10.0
libtpu: 0.0.40
codegen_flags: <defaults>
</compile_context>

<pallas_src>
import math
import functools

import jax
import jax.numpy as jnp
from jax.experimental import pallas as pl
from jax.experimental.pallas import tpu as pltpu


# ----------------------------- in-kernel helpers -----------------------------

def _layernorm(v, g, b, eps=1e-5):
    mu = jnp.mean(v, axis=-1, keepdims=True)
    var = jnp.mean((v - mu) ** 2, axis=-1, keepdims=True)
    return (v - mu) * jax.lax.rsqrt(var + eps) * g + b


def _erf(v):
    # Abramowitz & Stegun 7.1.26 (max abs error ~1.5e-7 -- f32 resolution).
    # Uses only exp / mul / add / abs / where, all of which lower in Mosaic.
    a1, a2, a3, a4, a5 = (0.254829592, -0.284496736, 1.421413741,
                          -1.453152027, 1.061405429)
    p = 0.3275911
    av = jnp.abs(v)
    t = 1.0 / (1.0 + p * av)
    poly = ((((a5 * t + a4) * t + a3) * t + a2) * t + a1) * t
    y = 1.0 - poly * jnp.exp(-av * av)
    return jnp.where(v >= 0.0, y, -y)


def _gelu_exact(v):
    # nn.GELU() default = exact erf-based GELU.
    return 0.5 * v * (1.0 + _erf(v * (1.0 / math.sqrt(2.0))))


# ----------------------------- kernel -----------------------------------------

def block_kernel(x_ref,
                 ln1_g_ref, ln1_b_ref, ln2_g_ref, ln2_b_ref,
                 wq_ref, bq_ref, wk_ref, bk_ref, wv_ref, bv_ref,
                 wo_ref, bo_ref, wfc_ref, bfc_ref, wpr_ref, bpr_ref,
                 o_ref, *, num_heads, seq_len, compute_dtype):
    x = x_ref[...]                           # (R, E) slab, R = Bt * S rows
    R, E = x.shape
    S = seq_len
    Bt = R // S
    H = num_heads
    Dh = E // H
    scale = 1.0 / math.sqrt(Dh)

    def mm(a, w_ref):
        # bf16 (or f32) MXU inputs, always f32 accumulation.
        return jnp.dot(a.astype(compute_dtype),
                       w_ref[...].astype(compute_dtype),
                       preferred_element_type=jnp.float32)

    # ---------------- attention branch ----------------
    h1 = _layernorm(x, ln1_g_ref[...], ln1_b_ref[...])
    q = (mm(h1, wq_ref) + bq_ref[...]) * scale        # (R, E), bias scaled too
    k = mm(h1, wk_ref) + bk_ref[...]
    v = mm(h1, wv_ref) + bv_ref[...]

    # Pack heads into a single (H*Bt, S, Dh) batch for one batched matmul.
    def to_heads(t):
        t3 = t.reshape(Bt, S, E)                               # leading split
        return jnp.concatenate(
            [t3[:, :, hd * Dh:(hd + 1) * Dh] for hd in range(H)], axis=0)

    qh, kh, vh = to_heads(q), to_heads(k), to_heads(v)         # (H*Bt, S, Dh)

    sc = jnp.einsum('bqd,bkd->bqk',
                    qh.astype(compute_dtype), kh.astype(compute_dtype),
                    preferred_element_type=jnp.float32)        # (H*Bt, S, S)

    # Additive causal mask with a finite large-negative (no inf/NaN hazards).
    row = jax.lax.broadcasted_iota(jnp.int32, (S, S), 0)
    col = jax.lax.broadcasted_iota(jnp.int32, (S, S), 1)
    mask_bias = jnp.where(col <= row, 0.0, -1e30).astype(jnp.float32)
    sc = sc + mask_bias[None, :, :]

    m = jnp.max(sc, axis=-1, keepdims=True)
    p = jnp.exp(sc - m)
    denom = jnp.sum(p, axis=-1, keepdims=True)
    p = p * pl.reciprocal(denom, approx=True)          # divide on the EUP slot
    # TODO(synk): attention-weight dropout omitted (eval-mode identity).

    ctxh = jnp.einsum('bqk,bkd->bqd',
                      p.astype(compute_dtype), vh.astype(compute_dtype),
                      preferred_element_type=jnp.float32)      # (H*Bt, S, Dh)
    ctx = jnp.concatenate(
        [ctxh[hd * Bt:(hd + 1) * Bt] for hd in range(H)], axis=-1)  # (Bt,S,E)
    ctx = ctx.reshape(R, E)

    x = x + mm(ctx, wo_ref) + bo_ref[...]

    # ---------------- MLP branch ----------------
    h2 = _layernorm(x, ln2_g_ref[...], ln2_b_ref[...])
    fc = _gelu_exact(mm(h2, wfc_ref) + bfc_ref[...])           # (R, 4E)
    proj = mm(fc, wpr_ref) + bpr_ref[...]                      # (R, E)
    # nn.Dropout: identity in eval mode
    o_ref[...] = (x + proj).astype(o_ref.dtype)


# ----------------------------- wrapper ----------------------------------------

def block_forward(x, params, num_heads, *, batch_tile=None,
                  compute_dtype=jnp.float32):
    B, S, E = x.shape

    # Pick a batch tile so each grid step feeds the MXU ~128 rows (good on
    # v5e's 128-wide passes and a clean sub-multiple for v6e/v7x 256-wide).
    if batch_tile is None:
        batch_tile = max(1, min(B, -(-128 // S)))
    while B % batch_tile:
        batch_tile -= 1
    rows_per_step = batch_tile * S
    grid = (B // batch_tile,)

    use_bf16 = jnp.dtype(compute_dtype) != jnp.dtype(jnp.float32)
    cast_w = (lambda w: w.astype(compute_dtype)) if use_bf16 else (lambda w: w)

    # Flatten activations to a 2-D (B*S, E) slab: matmuls see M = Bt*S rows
    # and the I/O blocks are lane-dense whenever E is a multiple of 128.
    x2 = x.reshape(B * S, E)

    operands = [
        x2,
        params["ln1_g"], params["ln1_b"], params["ln2_g"], params["ln2_b"],
        cast_w(params["w_q_t"]), params["b_q"],
        cast_w(params["w_k_t"]), params["b_k"],
        cast_w(params["w_v_t"]), params["b_v"],
        cast_w(params["w_o_t"]), params["b_o"],
        cast_w(params["w_fc_t"]), params["b_fc"],
        cast_w(params["w_pr_t"]), params["b_pr"],
    ]

    def resident(arr):  # full array, same block every step (stays in VMEM)
        n = arr.ndim
        return pl.BlockSpec(arr.shape, lambda i, _n=n: (0,) * _n)

    in_specs = ([pl.BlockSpec((rows_per_step, E), lambda i: (i, 0))]
                + [resident(a) for a in operands[1:]])

    kernel = functools.partial(block_kernel, num_heads=num_heads, seq_len=S,
                               compute_dtype=compute_dtype)

    out2 = pl.pallas_call(
        kernel,
        out_shape=jax.ShapeDtypeStruct((B * S, E), x.dtype),
        grid=grid,
        in_specs=in_specs,
        out_specs=pl.BlockSpec((rows_per_step, E), lambda i: (i, 0)),
        compiler_params=pltpu.CompilerParams(
            dimension_semantics=("parallel",),
            vmem_limit_bytes=32 * 1024 * 1024),
    )(*operands)
    # TODO(synk): for large E (>=1024) on v7x (64 MiB VMEM), add a grid axis
    # tiling the 4E MLP dimension ("arbitrary") instead of loading the
    # (E,4E)/(4E,E) weights whole.
    return out2.reshape(B, S, E)


# ----------------------------- pure-JAX reference ------------------------------

def block_reference(x, p, num_heads):
    B, S, E = x.shape
    Dh = E // num_heads
    hp = jax.lax.Precision.HIGHEST

    def ln(v, g, b):
        mu = v.mean(-1, keepdims=True)
        var = ((v - mu) ** 2).mean(-1, keepdims=True)
        return (v - mu) / jnp.sqrt(var + 1e-5) * g + b

    h = ln(x, p["ln1_g"], p["ln1_b"])
    q = jnp.einsum("bse,ef->bsf", h, p["w_q_t"], precision=hp) + p["b_q"]
    k = jnp.einsum("bse,ef->bsf", h, p["w_k_t"], precision=hp) + p["b_k"]
    v = jnp.einsum("bse,ef->bsf", h, p["w_v_t"], precision=hp) + p["b_v"]
    q = q.reshape(B, S, num_heads, Dh).transpose(0, 2, 1, 3)
    k = k.reshape(B, S, num_heads, Dh).transpose(0, 2, 1, 3)
    v = v.reshape(B, S, num_heads, Dh).transpose(0, 2, 1, 3)
    sc = jnp.einsum("bhqd,bhkd->bhqk", q, k, precision=hp) / math.sqrt(Dh)
    mask = jnp.triu(jnp.full((S, S), -jnp.inf, dtype=x.dtype), k=1)
    sc = sc + mask
    w = jax.nn.softmax(sc, axis=-1)
    ctx = jnp.einsum("bhqk,bhkd->bhqd", w, v, precision=hp)
    ctx = ctx.transpose(0, 2, 1, 3).reshape(B, S, E)
    x = x + jnp.einsum("bse,ef->bsf", ctx, p["w_o_t"], precision=hp) + p["b_o"]

    h2 = ln(x, p["ln2_g"], p["ln2_b"])
    fc = jnp.einsum("bse,ef->bsf", h2, p["w_fc_t"], precision=hp) + p["b_fc"]
    fc = jax.nn.gelu(fc, approximate=False)            # exact (erf) GELU
    proj = jnp.einsum("bsf,fe->bse", fc, p["w_pr_t"], precision=hp) + p["b_pr"]
    return x + proj


# ----------------------------- main ---------------------------------------------

if __name__ == "__main__":
    B, S, E, H = 2, 8, 32, 4       # batch, seq, block_embd, num_heads
    key = jax.random.PRNGKey(0)
    ks = jax.random.split(key, 14)
    scw = 0.05

    # Parameters created in PyTorch layouts, then transposed to (in, out).
    in_proj_w = scw * jax.random.normal(ks[0], (3 * E, E), jnp.float32)
    in_proj_b = scw * jax.random.normal(ks[1], (3 * E,), jnp.float32)
    out_proj_w = scw * jax.random.normal(ks[2], (E, E), jnp.float32)
    out_proj_b = scw * jax.random.normal(ks[3], (E,), jnp.float32)
    fc_w = scw * jax.random.normal(ks[4], (4 * E, E), jnp.float32)
    fc_b = scw * jax.random.normal(ks[5], (4 * E,), jnp.float32)
    pr_w = scw * jax.random.normal(ks[6], (E, 4 * E), jnp.float32)
    pr_b = scw * jax.random.normal(ks[7], (E,), jnp.float32)

    params = {
        "ln1_g": 1.0 + 0.1 * jax.random.normal(ks[8], (1, E), jnp.float32),
        "ln1_b": 0.1 * jax.random.normal(ks[9], (1, E), jnp.float32),
        "ln2_g": 1.0 + 0.1 * jax.random.normal(ks[10], (1, E), jnp.float32),
        "ln2_b": 0.1 * jax.random.normal(ks[11], (1, E), jnp.float32),
        # PyTorch in_proj_weight rows [0:E]=Q, [E:2E]=K, [2E:3E]=V.
        "w_q_t": in_proj_w[:E].T,       "b_q": in_proj_b[:E][None, :],
        "w_k_t": in_proj_w[E:2 * E].T,  "b_k": in_proj_b[E:2 * E][None, :],
        "w_v_t": in_proj_w[2 * E:].T,   "b_v": in_proj_b[2 * E:][None, :],
        "w_o_t": out_proj_w.T,          "b_o": out_proj_b[None, :],
        "w_fc_t": fc_w.T,               "b_fc": fc_b[None, :],
        "w_pr_t": pr_w.T,               "b_pr": pr_b[None, :],
    }

    x = jax.random.normal(ks[12], (B, S, E), jnp.float32)

    ref = jax.block_until_ready(block_reference(x, params, H))

    # f32 MXU inputs — faithful to the PyTorch f32 eval forward.
    out_f32 = jax.block_until_ready(block_forward(x, params, H))
    assert out_f32.shape == (B, S, E)
    assert jnp.allclose(out_f32, ref, atol=2e-3, rtol=2e-3), (
        f"f32 max abs diff {jnp.max(jnp.abs(out_f32 - ref))}")

    # bf16 MXU inputs + f32 accumulation — the v6e/v7x fast path.
    out_bf16 = jax.block_until_ready(
        block_forward(x, params, H, compute_dtype=jnp.bfloat16))
    assert jnp.allclose(out_bf16, ref, atol=3e-2, rtol=3e-2), (
        f"bf16 max abs diff {jnp.max(jnp.abs(out_bf16 - ref))}")

    print("KERNEL_OK")
</pallas_src>

<mosaic_0001>
module attributes {stable_mosaic.version = 11 : i64} {
  func.func @block_kernel(%arg0: i32, %arg1: memref<16x32xf32, #tpu.memory_space<vmem>>, %arg2: memref<1x32xf32, #tpu.memory_space<vmem>>, %arg3: memref<1x32xf32, #tpu.memory_space<vmem>>, %arg4: memref<1x32xf32, #tpu.memory_space<vmem>>, %arg5: memref<1x32xf32, #tpu.memory_space<vmem>>, %arg6: memref<32x32xf32, #tpu.memory_space<vmem>>, %arg7: memref<1x32xf32, #tpu.memory_space<vmem>>, %arg8: memref<32x32xf32, #tpu.memory_space<vmem>>, %arg9: memref<1x32xf32, #tpu.memory_space<vmem>>, %arg10: memref<32x32xf32, #tpu.memory_space<vmem>>, %arg11: memref<1x32xf32, #tpu.memory_space<vmem>>, %arg12: memref<32x32xf32, #tpu.memory_space<vmem>>, %arg13: memref<1x32xf32, #tpu.memory_space<vmem>>, %arg14: memref<32x128xf32, #tpu.memory_space<vmem>>, %arg15: memref<1x128xf32, #tpu.memory_space<vmem>>, %arg16: memref<128x32xf32, #tpu.memory_space<vmem>>, %arg17: memref<1x32xf32, #tpu.memory_space<vmem>>, %arg18: memref<16x32xf32, #tpu.memory_space<vmem>>) attributes {dimension_semantics = [#tpu.dimension_semantics<parallel>], iteration_bounds = array<i64: 1>, scalar_prefetch = 0 : i64, scratch_operands = 0 : i64, tpu.core_type = #tpu.core_type<tc>, window_params = [{transform_indices = @transform_0, window_bounds = array<i64: 16, 32>}, {pipeline_mode = #tpu.pipeline_mode<synchronous>, transform_indices = @transform_1, window_bounds = array<i64: 1, 32>}, {pipeline_mode = #tpu.pipeline_mode<synchronous>, transform_indices = @transform_2, window_bounds = array<i64: 1, 32>}, {pipeline_mode = #tpu.pipeline_mode<synchronous>, transform_indices = @transform_3, window_bounds = array<i64: 1, 32>}, {pipeline_mode = #tpu.pipeline_mode<synchronous>, transform_indices = @transform_4, window_bounds = array<i64: 1, 32>}, {pipeline_mode = #tpu.pipeline_mode<synchronous>, transform_indices = @transform_5, window_bounds = array<i64: 32, 32>}, {pipeline_mode = #tpu.pipeline_mode<synchronous>, transform_indices = @transform_6, window_bounds = array<i64: 1, 32>}, {pipeline_mode = #tpu.pipeline_mode<synchronous>, transform_indices = @transform_7, window_bounds = array<i64: 32, 32>}, {pipeline_mode = #tpu.pipeline_mode<synchronous>, transform_indices = @transform_8, window_bounds = array<i64: 1, 32>}, {pipeline_mode = #tpu.pipeline_mode<synchronous>, transform_indices = @transform_9, window_bounds = array<i64: 32, 32>}, {pipeline_mode = #tpu.pipeline_mode<synchronous>, transform_indices = @transform_10, window_bounds = array<i64: 1, 32>}, {pipeline_mode = #tpu.pipeline_mode<synchronous>, transform_indices = @transform_11, window_bounds = array<i64: 32, 32>}, {pipeline_mode = #tpu.pipeline_mode<synchronous>, transform_indices = @transform_12, window_bounds = array<i64: 1, 32>}, {pipeline_mode = #tpu.pipeline_mode<synchronous>, transform_indices = @transform_13, window_bounds = array<i64: 32, 128>}, {pipeline_mode = #tpu.pipeline_mode<synchronous>, transform_indices = @transform_14, window_bounds = array<i64: 1, 128>}, {pipeline_mode = #tpu.pipeline_mode<synchronous>, transform_indices = @transform_15, window_bounds = array<i64: 128, 32>}, {pipeline_mode = #tpu.pipeline_mode<synchronous>, transform_indices = @transform_16, window_bounds = array<i64: 1, 32>}, {transform_indices = @transform_17, window_bounds = array<i64: 16, 32>}]} {
    %c0 = arith.constant 0 : index
    %c0_0 = arith.constant 0 : index
    %0 = vector.load %arg1[%c0, %c0_0] : memref<16x32xf32, #tpu.memory_space<vmem>>, vector<16x32xf32>
    %c0_1 = arith.constant 0 : index
    %c0_2 = arith.constant 0 : index
    %1 = vector.load %arg2[%c0_1, %c0_2] : memref<1x32xf32, #tpu.memory_space<vmem>>, vector<1x32xf32>
    %c0_3 = arith.constant 0 : index
    %c0_4 = arith.constant 0 : index
    %2 = vector.load %arg3[%c0_3, %c0_4] : memref<1x32xf32, #tpu.memory_space<vmem>>, vector<1x32xf32>
    %cst = arith.constant dense<0.000000e+00> : vector<16xf32>
    %3 = vector.multi_reduction <add>, %0, %cst [1] : vector<16x32xf32> to vector<16xf32>
    %4 = vector.shape_cast %3 : vector<16xf32> to vector<16x1xf32>
    %cst_5 = arith.constant 3.200000e+01 : f32
    %5 = vector.broadcast %cst_5 : f32 to vector<16x1xf32>
    %6 = arith.divf %4, %5 : vector<16x1xf32>
    %7 = vector.broadcast %6 : vector<16x1xf32> to vector<16x32xf32>
    %8 = arith.subf %0, %7 : vector<16x32xf32>
    %9 = arith.mulf %8, %8 : vector<16x32xf32>
    %cst_6 = arith.constant dense<0.000000e+00> : vector<16xf32>
    %10 = vector.multi_reduction <add>, %9, %cst_6 [1] : vector<16x32xf32> to vector<16xf32>
    %11 = vector.shape_cast %10 : vector<16xf32> to vector<16x1xf32>
    %cst_7 = arith.constant 3.200000e+01 : f32
    %12 = vector.broadcast %cst_7 : f32 to vector<16x1xf32>
    %13 = arith.divf %11, %12 : vector<16x1xf32>
    %14 = vector.broadcast %6 : vector<16x1xf32> to vector<16x32xf32>
    %15 = arith.subf %0, %14 : vector<16x32xf32>
    %cst_8 = arith.constant 9.99999974E-6 : f32
    %16 = vector.broadcast %cst_8 : f32 to vector<16x1xf32>
    %17 = arith.addf %13, %16 : vector<16x1xf32>
    %18 = math.rsqrt %17 : vector<16x1xf32>
    %19 = vector.broadcast %18 : vector<16x1xf32> to vector<16x32xf32>
    %20 = arith.mulf %15, %19 : vector<16x32xf32>
    %21 = vector.broadcast %1 : vector<1x32xf32> to vector<16x32xf32>
    %22 = arith.mulf %20, %21 : vector<16x32xf32>
    %23 = vector.broadcast %2 : vector<1x32xf32> to vector<16x32xf32>
    %24 = arith.addf %22, %23 : vector<16x32xf32>
    %c0_9 = arith.constant 0 : index
    %c0_10 = arith.constant 0 : index
    %25 = vector.load %arg6[%c0_9, %c0_10] : memref<32x32xf32, #tpu.memory_space<vmem>>, vector<32x32xf32>
    %cst_11 = arith.constant dense<0.000000e+00> : vector<16x32xf32>
    %26 = tpu.matmul %24, %25, %cst_11 {dimension_numbers = #tpu.dot_dimension_numbers<[1], [0], [0], [1], [0, 0, 1, 1], [], []>} : vector<16x32xf32>, vector<32x32xf32>, vector<16x32xf32> -> vector<16x32xf32>
    %c0_12 = arith.constant 0 : index
    %c0_13 = arith.constant 0 : index
    %27 = vector.load %arg7[%c0_12, %c0_13] : memref<1x32xf32, #tpu.memory_space<vmem>>, vector<1x32xf32>
    %28 = vector.broadcast %27 : vector<1x32xf32> to vector<16x32xf32>
    %29 = arith.addf %26, %28 : vector<16x32xf32>
    %cst_14 = arith.constant 0.353553385 : f32
    %30 = vector.broadcast %cst_14 : f32 to vector<16x32xf32>
    %31 = arith.mulf %29, %30 : vector<16x32xf32>
    %c0_15 = arith.constant 0 : index
    %c0_16 = arith.constant 0 : index
    %32 = vector.load %arg8[%c0_15, %c0_16] : memref<32x32xf32, #tpu.memory_space<vmem>>, vector<32x32xf32>
    %cst_17 = arith.constant dense<0.000000e+00> : vector<16x32xf32>
    %33 = tpu.matmul %24, %32, %cst_17 {dimension_numbers = #tpu.dot_dimension_numbers<[1], [0], [0], [1], [0, 0, 1, 1], [], []>} : vector<16x32xf32>, vector<32x32xf32>, vector<16x32xf32> -> vector<16x32xf32>
    %c0_18 = arith.constant 0 : index
    %c0_19 = arith.constant 0 : index
    %34 = vector.load %arg9[%c0_18, %c0_19] : memref<1x32xf32, #tpu.memory_space<vmem>>, vector<1x32xf32>
    %35 = vector.broadcast %34 : vector<1x32xf32> to vector<16x32xf32>
    %36 = arith.addf %33, %35 : vector<16x32xf32>
    %c0_20 = arith.constant 0 : index
    %c0_21 = arith.constant 0 : index
    %37 = vector.load %arg10[%c0_20, %c0_21] : memref<32x32xf32, #tpu.memory_space<vmem>>, vector<32x32xf32>
    %cst_22 = arith.constant dense<0.000000e+00> : vector<16x32xf32>
    %38 = tpu.matmul %24, %37, %cst_22 {dimension_numbers = #tpu.dot_dimension_numbers<[1], [0], [0], [1], [0, 0, 1, 1], [], []>} : vector<16x32xf32>, vector<32x32xf32>, vector<16x32xf32> -> vector<16x32xf32>
    %c0_23 = arith.constant 0 : index
    %c0_24 = arith.constant 0 : index
    %39 = vector.load %arg11[%c0_23, %c0_24] : memref<1x32xf32, #tpu.memory_space<vmem>>, vector<1x32xf32>
    %40 = vector.broadcast %39 : vector<1x32xf32> to vector<16x32xf32>
    %41 = arith.addf %38, %40 : vector<16x32xf32>
    %42 = vector.shape_cast %31 : vector<16x32xf32> to vector<2x8x32xf32>
    %43 = vector.extract_strided_slice %42 {offsets = [0, 0, 0], sizes = [2, 8, 8], strides = [1, 1, 1]} : vector<2x8x32xf32> to vector<2x8x8xf32>
    %44 = vector.extract_strided_slice %42 {offsets = [0, 0, 8], sizes = [2, 8, 8], strides = [1, 1, 1]} : vector<2x8x32xf32> to vector<2x8x8xf32>
    %45 = vector.extract_strided_slice %42 {offsets = [0, 0, 16], sizes = [2, 8, 8], strides = [1, 1, 1]} : vector<2x8x32xf32> to vector<2x8x8xf32>
    %46 = vector.extract_strided_slice %42 {offsets = [0, 0, 24], sizes = [2, 8, 8], strides = [1, 1, 1]} : vector<2x8x32xf32> to vector<2x8x8xf32>
    %47 = tpu.concatenate %43, %44, %45, %46 in 0 : vector<2x8x8xf32>, vector<2x8x8xf32>, vector<2x8x8xf32>, vector<2x8x8xf32> -> vector<8x8x8xf32>
    %48 = vector.shape_cast %36 : vector<16x32xf32> to vector<2x8x32xf32>
    %49 = vector.extract_strided_slice %48 {offsets = [0, 0, 0], sizes = [2, 8, 8], strides = [1, 1, 1]} : vector<2x8x32xf32> to vector<2x8x8xf32>
    %50 = vector.extract_strided_slice %48 {offsets = [0, 0, 8], sizes = [2, 8, 8], strides = [1, 1, 1]} : vector<2x8x32xf32> to vector<2x8x8xf32>
    %51 = vector.extract_strided_slice %48 {offsets = [0, 0, 16], sizes = [2, 8, 8], strides = [1, 1, 1]} : vector<2x8x32xf32> to vector<2x8x8xf32>
    %52 = vector.extract_strided_slice %48 {offsets = [0, 0, 24], sizes = [2, 8, 8], strides = [1, 1, 1]} : vector<2x8x32xf32> to vector<2x8x8xf32>
    %53 = tpu.concatenate %49, %50, %51, %52 in 0 : vector<2x8x8xf32>, vector<2x8x8xf32>, vector<2x8x8xf32>, vector<2x8x8xf32> -> vector<8x8x8xf32>
    %54 = vector.shape_cast %41 : vector<16x32xf32> to vector<2x8x32xf32>
    %55 = vector.extract_strided_slice %54 {offsets = [0, 0, 0], sizes = [2, 8, 8], strides = [1, 1, 1]} : vector<2x8x32xf32> to vector<2x8x8xf32>
    %56 = vector.extract_strided_slice %54 {offsets = [0, 0, 8], sizes = [2, 8, 8], strides = [1, 1, 1]} : vector<2x8x32xf32> to vector<2x8x8xf32>
    %57 = vector.extract_strided_slice %54 {offsets = [0, 0, 16], sizes = [2, 8, 8], strides = [1, 1, 1]} : vector<2x8x32xf32> to vector<2x8x8xf32>
    %58 = vector.extract_strided_slice %54 {offsets = [0, 0, 24], sizes = [2, 8, 8], strides = [1, 1, 1]} : vector<2x8x32xf32> to vector<2x8x8xf32>
    %59 = tpu.concatenate %55, %56, %57, %58 in 0 : vector<2x8x8xf32>, vector<2x8x8xf32>, vector<2x8x8xf32>, vector<2x8x8xf32> -> vector<8x8x8xf32>
    "tpu.trace_start"() <{level = 10 : i32, message = "bqd,bkd->bqk"}> : () -> ()
    %cst_25 = arith.constant dense<0.000000e+00> : vector<8x8x8xf32>
    %60 = tpu.matmul %47, %53, %cst_25 {dimension_numbers = #tpu.dot_dimension_numbers<[2], [2], [1], [1], [0, 0, 0, 1, 1, 1], [0], [0]>} : vector<8x8x8xf32>, vector<8x8x8xf32>, vector<8x8x8xf32> -> vector<8x8x8xf32>
    "tpu.trace_stop"() : () -> ()
    %61 = tpu.iota {dimensions = array<i32: 0>} : vector<8x8xi32>
    %62 = tpu.iota {dimensions = array<i32: 1>} : vector<8x8xi32>
    %63 = arith.cmpi sle, %62, %61 : vector<8x8xi32>
    %cst_26 = arith.constant 0.000000e+00 : f32
    %cst_27 = arith.constant -1.000000e+30 : f32
    %64 = vector.broadcast %cst_26 : f32 to vector<8x8xf32>
    %65 = vector.broadcast %cst_27 : f32 to vector<8x8xf32>
    %66 = arith.select %63, %64, %65 : vector<8x8xi1>, vector<8x8xf32>
    %67 = vector.shape_cast %66 : vector<8x8xf32> to vector<1x8x8xf32>
    %68 = vector.broadcast %67 : vector<1x8x8xf32> to vector<8x8x8xf32>
    %69 = arith.addf %60, %68 : vector<8x8x8xf32>
    %cst_28 = arith.constant dense<0xFF800000> : vector<8x8xf32>
    %70 = vector.multi_reduction <maximumf>, %69, %cst_28 [2] : vector<8x8x8xf32> to vector<8x8xf32>
    %71 = vector.shape_cast %70 : vector<8x8xf32> to vector<8x8x1xf32>
    %72 = vector.broadcast %71 : vector<8x8x1xf32> to vector<8x8x8xf32>
    %73 = arith.subf %69, %72 : vector<8x8x8xf32>
    %74 = math.exp %73 : vector<8x8x8xf32>
    %cst_29 = arith.constant dense<0.000000e+00> : vector<8x8xf32>
    %75 = vector.multi_reduction <add>, %74, %cst_29 [2] : vector<8x8x8xf32> to vector<8x8xf32>
    %76 = vector.shape_cast %75 : vector<8x8xf32> to vector<8x8x1xf32>
    %77 = tpu.reciprocal %76 {approx = true} : vector<8x8x1xf32> -> vector<8x8x1xf32>
    %78 = vector.broadcast %77 : vector<8x8x1xf32> to vector<8x8x8xf32>
    %79 = arith.mulf %74, %78 : vector<8x8x8xf32>
    "tpu.trace_start"() <{level = 10 : i32, message = "bqk,bkd->bqd"}> : () -> ()
    %cst_30 = arith.constant dense<0.000000e+00> : vector<8x8x8xf32>
    %80 = tpu.matmul %79, %59, %cst_30 {dimension_numbers = #tpu.dot_dimension_numbers<[2], [1], [1], [2], [0, 0, 0, 1, 1, 2], [0], [0]>} : vector<8x8x8xf32>, vector<8x8x8xf32>, vector<8x8x8xf32> -> vector<8x8x8xf32>
    "tpu.trace_stop"() : () -> ()
    %81 = vector.extract_strided_slice %80 {offsets = [0, 0, 0], sizes = [2, 8, 8], strides = [1, 1, 1]} : vector<8x8x8xf32> to vector<2x8x8xf32>
    %82 = vector.extract_strided_slice %80 {offsets = [2, 0, 0], sizes = [2, 8, 8], strides = [1, 1, 1]} : vector<8x8x8xf32> to vector<2x8x8xf32>
    %83 = vector.extract_strided_slice %80 {offsets = [4, 0, 0], sizes = [2, 8, 8], strides = [1, 1, 1]} : vector<8x8x8xf32> to vector<2x8x8xf32>
    %84 = vector.extract_strided_slice %80 {offsets = [6, 0, 0], sizes = [2, 8, 8], strides = [1, 1, 1]} : vector<8x8x8xf32> to vector<2x8x8xf32>
    %85 = tpu.concatenate %81, %82, %83, %84 in 2 : vector<2x8x8xf32>, vector<2x8x8xf32>, vector<2x8x8xf32>, vector<2x8x8xf32> -> vector<2x8x32xf32>
    %86 = vector.shape_cast %85 : vector<2x8x32xf32> to vector<16x32xf32>
    %c0_31 = arith.constant 0 : index
    %c0_32 = arith.constant 0 : index
    %87 = vector.load %arg12[%c0_31, %c0_32] : memref<32x32xf32, #tpu.memory_space<vmem>>, vector<32x32xf32>
    %cst_33 = arith.constant dense<0.000000e+00> : vector<16x32xf32>
    %88 = tpu.matmul %86, %87, %cst_33 {dimension_numbers = #tpu.dot_dimension_numbers<[1], [0], [0], [1], [0, 0, 1, 1], [], []>} : vector<16x32xf32>, vector<32x32xf32>, vector<16x32xf32> -> vector<16x32xf32>
    %89 = arith.addf %0, %88 : vector<16x32xf32>
    %c0_34 = arith.constant 0 : index
    %c0_35 = arith.constant 0 : index
    %90 = vector.load %arg13[%c0_34, %c0_35] : memref<1x32xf32, #tpu.memory_space<vmem>>, vector<1x32xf32>
    %91 = vector.broadcast %90 : vector<1x32xf32> to vector<16x32xf32>
    %92 = arith.addf %89, %91 : vector<16x32xf32>
    %c0_36 = arith.constant 0 : index
    %c0_37 = arith.constant 0 : index
    %93 = vector.load %arg4[%c0_36, %c0_37] : memref<1x32xf32, #tpu.memory_space<vmem>>, vector<1x32xf32>
    %c0_38 = arith.constant 0 : index
    %c0_39 = arith.constant 0 : index
    %94 = vector.load %arg5[%c0_38, %c0_39] : memref<1x32xf32, #tpu.memory_space<vmem>>, vector<1x32xf32>
    %cst_40 = arith.constant dense<0.000000e+00> : vector<16xf32>
    %95 = vector.multi_reduction <add>, %92, %cst_40 [1] : vector<16x32xf32> to vector<16xf32>
    %96 = vector.shape_cast %95 : vector<16xf32> to vector<16x1xf32>
    %cst_41 = arith.constant 3.200000e+01 : f32
    %97 = vector.broadcast %cst_41 : f32 to vector<16x1xf32>
    %98 = arith.divf %96, %97 : vector<16x1xf32>
    %99 = vector.broadcast %98 : vector<16x1xf32> to vector<16x32xf32>
    %100 = arith.subf %92, %99 : vector<16x32xf32>
    %101 = arith.mulf %100, %100 : vector<16x32xf32>
    %cst_42 = arith.constant dense<0.000000e+00> : vector<16xf32>
    %102 = vector.multi_reduction <add>, %101, %cst_42 [1] : vector<16x32xf32> to vector<16xf32>
    %103 = vector.shape_cast %102 : vector<16xf32> to vector<16x1xf32>
    %cst_43 = arith.constant 3.200000e+01 : f32
    %104 = vector.broadcast %cst_43 : f32 to vector<16x1xf32>
    %105 = arith.divf %103, %104 : vector<16x1xf32>
    %106 = vector.broadcast %98 : vector<16x1xf32> to vector<16x32xf32>
    %107 = arith.subf %92, %106 : vector<16x32xf32>
    %cst_44 = arith.constant 9.99999974E-6 : f32
    %108 = vector.broadcast %cst_44 : f32 to vector<16x1xf32>
    %109 = arith.addf %105, %108 : vector<16x1xf32>
    %110 = math.rsqrt %109 : vector<16x1xf32>
    %111 = vector.broadcast %110 : vector<16x1xf32> to vector<16x32xf32>
    %112 = arith.mulf %107, %111 : vector<16x32xf32>
    %113 = vector.broadcast %93 : vector<1x32xf32> to vector<16x32xf32>
    %114 = arith.mulf %112, %113 : vector<16x32xf32>
    %115 = vector.broadcast %94 : vector<1x32xf32> to vector<16x32xf32>
    %116 = arith.addf %114, %115 : vector<16x32xf32>
    %c0_45 = arith.constant 0 : index
    %c0_46 = arith.constant 0 : index
    %117 = vector.load %arg14[%c0_45, %c0_46] : memref<32x128xf32, #tpu.memory_space<vmem>>, vector<32x128xf32>
    %cst_47 = arith.constant dense<0.000000e+00> : vector<16x128xf32>
    %118 = tpu.matmul %116, %117, %cst_47 {dimension_numbers = #tpu.dot_dimension_numbers<[1], [0], [0], [1], [0, 0, 1, 1], [], []>} : vector<16x32xf32>, vector<32x128xf32>, vector<16x128xf32> -> vector<16x128xf32>
    %c0_48 = arith.constant 0 : index
    %c0_49 = arith.constant 0 : index
    %119 = vector.load %arg15[%c0_48, %c0_49] : memref<1x128xf32, #tpu.memory_space<vmem>>, vector<1x128xf32>
    %120 = vector.broadcast %119 : vector<1x128xf32> to vector<16x128xf32>
    %121 = arith.addf %118, %120 : vector<16x128xf32>
    %cst_50 = arith.constant 5.000000e-01 : f32
    %122 = vector.broadcast %cst_50 : f32 to vector<16x128xf32>
    %123 = arith.mulf %122, %121 : vector<16x128xf32>
    %cst_51 = arith.constant 0.707106769 : f32
    %124 = vector.broadcast %cst_51 : f32 to vector<16x128xf32>
    %125 = arith.mulf %121, %124 : vector<16x128xf32>
    %126 = math.absf %125 : vector<16x128xf32>
    %cst_52 = arith.constant 0.327591091 : f32
    %127 = vector.broadcast %cst_52 : f32 to vector<16x128xf32>
    %128 = arith.mulf %127, %126 : vector<16x128xf32>
    %cst_53 = arith.constant 1.000000e+00 : f32
    %129 = vector.broadcast %cst_53 : f32 to vector<16x128xf32>
    %130 = arith.addf %129, %128 : vector<16x128xf32>
    %cst_54 = arith.constant 1.000000e+00 : f32
    %131 = vector.broadcast %cst_54 : f32 to vector<16x128xf32>
    %132 = arith.divf %131, %130 : vector<16x128xf32>
    %cst_55 = arith.constant 1.06140542 : f32
    %133 = vector.broadcast %cst_55 : f32 to vector<16x128xf32>
    %134 = arith.mulf %133, %132 : vector<16x128xf32>
    %cst_56 = arith.constant -1.45315206 : f32
    %135 = vector.broadcast %cst_56 : f32 to vector<16x128xf32>
    %136 = arith.addf %134, %135 : vector<16x128xf32>
    %137 = arith.mulf %136, %132 : vector<16x128xf32>
    %cst_57 = arith.constant 1.42141378 : f32
    %138 = vector.broadcast %cst_57 : f32 to vector<16x128xf32>
    %139 = arith.addf %137, %138 : vector<16x128xf32>
    %140 = arith.mulf %139, %132 : vector<16x128xf32>
    %cst_58 = arith.constant -0.284496725 : f32
    %141 = vector.broadcast %cst_58 : f32 to vector<16x128xf32>
    %142 = arith.addf %140, %141 : vector<16x128xf32>
    %143 = arith.mulf %142, %132 : vector<16x128xf32>
    %cst_59 = arith.constant 0.254829586 : f32
    %144 = vector.broadcast %cst_59 : f32 to vector<16x128xf32>
    %145 = arith.addf %143, %144 : vector<16x128xf32>
    %146 = arith.mulf %145, %132 : vector<16x128xf32>
    %cst_60 = arith.constant 0.000000e+00 : f32
    %147 = vector.broadcast %cst_60 : f32 to vector<16x128xf32>
    %148 = arith.subf %147, %126 : vector<16x128xf32>
    %149 = arith.mulf %148, %126 : vector<16x128xf32>
    %150 = math.exp %149 : vector<16x128xf32>
    %151 = arith.mulf %146, %150 : vector<16x128xf32>
    %cst_61 = arith.constant 1.000000e+00 : f32
    %152 = vector.broadcast %cst_61 : f32 to vector<16x128xf32>
    %153 = arith.subf %152, %151 : vector<16x128xf32>
    %cst_62 = arith.constant 0.000000e+00 : f32
    %154 = vector.broadcast %cst_62 : f32 to vector<16x128xf32>
    %155 = arith.cmpf oge, %125, %154 : vector<16x128xf32>
    %cst_63 = arith.constant 0.000000e+00 : f32
    %156 = vector.broadcast %cst_63 : f32 to vector<16x128xf32>
    %157 = arith.subf %156, %153 : vector<16x128xf32>
    %158 = arith.select %155, %153, %157 : vector<16x128xi1>, vector<16x128xf32>
    %cst_64 = arith.constant 1.000000e+00 : f32
    %159 = vector.broadcast %cst_64 : f32 to vector<16x128xf32>
    %160 = arith.addf %159, %158 : vector<16x128xf32>
    %161 = arith.mulf %123, %160 : vector<16x128xf32>
    %c0_65 = arith.constant 0 : index
    %c0_66 = arith.constant 0 : index
    %162 = vector.load %arg16[%c0_65, %c0_66] : memref<128x32xf32, #tpu.memory_space<vmem>>, vector<128x32xf32>
    %cst_67 = arith.constant dense<0.000000e+00> : vector<16x32xf32>
    %163 = tpu.matmul %161, %162, %cst_67 {dimension_numbers = #tpu.dot_dimension_numbers<[1], [0], [0], [1], [0, 0, 1, 1], [], []>} : vector<16x128xf32>, vector<128x32xf32>, vector<16x32xf32> -> vector<16x32xf32>
    %c0_68 = arith.constant 0 : index
    %c0_69 = arith.constant 0 : index
    %164 = vector.load %arg17[%c0_68, %c0_69] : memref<1x32xf32, #tpu.memory_space<vmem>>, vector<1x32xf32>
    %165 = vector.broadcast %164 : vector<1x32xf32> to vector<16x32xf32>
    %166 = arith.addf %163, %165 : vector<16x32xf32>
    %167 = arith.addf %92, %166 : vector<16x32xf32>
    %c0_70 = arith.constant 0 : index
    %c0_71 = arith.constant 0 : index
    %168 = vector.load %arg18[%c0_70, %c0_71] : memref<16x32xf32, #tpu.memory_space<vmem>>, vector<16x32xf32>
    tpu.vector_store %arg18[%c0_70, %c0_71], %167 {strides = array<i32>} : memref<16x32xf32, #tpu.memory_space<vmem>>, vector<16x32xf32>,
    return
  }
  func.func @transform_0(%arg0: i32) -> (i32, i32) {
    %c0_i32 = arith.constant 0 : i32
    %c0_i32_0 = arith.constant 0 : i32
    return %arg0, %c0_i32 : i32, i32
  }
  func.func @transform_1(%arg0: i32) -> (i32, i32) {
    %c0_i32 = arith.constant 0 : i32
    %c0_i32_0 = arith.constant 0 : i32
    %c0_i32_1 = arith.constant 0 : i32
    return %c0_i32, %c0_i32_0 : i32, i32
  }
  func.func @transform_2(%arg0: i32) -> (i32, i32) {
    %c0_i32 = arith.constant 0 : i32
    %c0_i32_0 = arith.constant 0 : i32
    %c0_i32_1 = arith.constant 0 : i32
    return %c0_i32, %c0_i32_0 : i32, i32
  }
  func.func @transform_3(%arg0: i32) -> (i32, i32) {
    %c0_i32 = arith.constant 0 : i32
    %c0_i32_0 = arith.constant 0 : i32
    %c0_i32_1 = arith.constant 0 : i32
    return %c0_i32, %c0_i32_0 : i32, i32
  }
  func.func @transform_4(%arg0: i32) -> (i32, i32) {
    %c0_i32 = arith.constant 0 : i32
    %c0_i32_0 = arith.constant 0 : i32
    %c0_i32_1 = arith.constant 0 : i32
    return %c0_i32, %c0_i32_0 : i32, i32
  }
  func.func @transform_5(%arg0: i32) -> (i32, i32) {
    %c0_i32 = arith.constant 0 : i32
    %c0_i32_0 = arith.constant 0 : i32
    %c0_i32_1 = arith.constant 0 : i32
    return %c0_i32, %c0_i32_0 : i32, i32
  }
  func.func @transform_6(%arg0: i32) -> (i32, i32) {
    %c0_i32 = arith.constant 0 : i32
    %c0_i32_0 = arith.constant 0 : i32
    %c0_i32_1 = arith.constant 0 : i32
    return %c0_i32, %c0_i32_0 : i32, i32
  }
  func.func @transform_7(%arg0: i32) -> (i32, i32) {
    %c0_i32 = arith.constant 0 : i32
    %c0_i32_0 = arith.constant 0 : i32
    %c0_i32_1 = arith.constant 0 : i32
    return %c0_i32, %c0_i32_0 : i32, i32
  }
  func.func @transform_8(%arg0: i32) -> (i32, i32) {
    %c0_i32 = arith.constant 0 : i32
    %c0_i32_0 = arith.constant 0 : i32
    %c0_i32_1 = arith.constant 0 : i32
    return %c0_i32, %c0_i32_0 : i32, i32
  }
  func.func @transform_9(%arg0: i32) -> (i32, i32) {
    %c0_i32 = arith.constant 0 : i32
    %c0_i32_0 = arith.constant 0 : i32
    %c0_i32_1 = arith.constant 0 : i32
    return %c0_i32, %c0_i32_0 : i32, i32
  }
  func.func @transform_10(%arg0: i32) -> (i32, i32) {
    %c0_i32 = arith.constant 0 : i32
    %c0_i32_0 = arith.constant 0 : i32
    %c0_i32_1 = arith.constant 0 : i32
    return %c0_i32, %c0_i32_0 : i32, i32
  }
  func.func @transform_11(%arg0: i32) -> (i32, i32) {
    %c0_i32 = arith.constant 0 : i32
    %c0_i32_0 = arith.constant 0 : i32
    %c0_i32_1 = arith.constant 0 : i32
    return %c0_i32, %c0_i32_0 : i32, i32
  }
  func.func @transform_12(%arg0: i32) -> (i32, i32) {
    %c0_i32 = arith.constant 0 : i32
    %c0_i32_0 = arith.constant 0 : i32
    %c0_i32_1 = arith.constant 0 : i32
    return %c0_i32, %c0_i32_0 : i32, i32
  }
  func.func @transform_13(%arg0: i32) -> (i32, i32) {
    %c0_i32 = arith.constant 0 : i32
    %c0_i32_0 = arith.constant 0 : i32
    %c0_i32_1 = arith.constant 0 : i32
    return %c0_i32, %c0_i32_0 : i32, i32
  }
  func.func @transform_14(%arg0: i32) -> (i32, i32) {
    %c0_i32 = arith.constant 0 : i32
    %c0_i32_0 = arith.constant 0 : i32
    %c0_i32_1 = arith.constant 0 : i32
    return %c0_i32, %c0_i32_0 : i32, i32
  }
  func.func @transform_15(%arg0: i32) -> (i32, i32) {
    %c0_i32 = arith.constant 0 : i32
    %c0_i32_0 = arith.constant 0 : i32
    %c0_i32_1 = arith.constant 0 : i32
    return %c0_i32, %c0_i32_0 : i32, i32
  }
  func.func @transform_16(%arg0: i32) -> (i32, i32) {
    %c0_i32 = arith.constant 0 : i32
    %c0_i32_0 = arith.constant 0 : i32
    %c0_i32_1 = arith.constant 0 : i32
    return %c0_i32, %c0_i32_0 : i32, i32
  }
  func.func @transform_17(%arg0: i32) -> (i32, i32) {
    %c0_i32 = arith.constant 0 : i32
    %c0_i32_0 = arith.constant 0 : i32
    return %arg0, %c0_i32 : i32, i32
  }
}

</mosaic_0001>

<bundles_post_ra>
// kernel: tpu_custom_call.1
= control target key start
LH: loop header
LB: loop body
LE: loop exit
PB: predicated region body
PF: predicated region fallthrough
CT: control target
= control target key end

     0   :  { %s1700_s0 = inlined_call_operand.hbm [shape: f32[16,32], index: 0, kind: input, shape index: {}]   ;;  %s1701_s1 = inlined_call_operand.hbm [shape: f32[1,32], index: 1, kind: input, shape index: {}]   ;;  %s1702_s2 = inlined_call_operand.vmem [shape: f32[1,32], index: 2, kind: input, shape index: {}]   ;;  %s1703_s3 = inlined_call_operand.hbm [shape: f32[1,32], index: 3, kind: input, shape index: {}]   ;;  %s1704_s4 = inlined_call_operand.vmem [shape: f32[1,32], index: 4, kind: input, shape index: {}]   ;;  %s1705_s5 = inlined_call_operand.vmem [shape: f32[32,32], index: 5, kind: input, shape index: {}]   ;;  %s1706_s6 = inlined_call_operand.vmem [shape: f32[1,32], index: 6, kind: input, shape index: {}]   ;;  %s1707_s7 = inlined_call_operand.vmem [shape: f32[32,32], index: 7, kind: input, shape index: {}]   ;;  %s1708_s8 = inlined_call_operand.vmem [shape: f32[1,32], index: 8, kind: input, shape index: {}]   ;;  %s1709_s9 = inlined_call_operand.vmem [shape: f32[32,32], index: 9, kind: input, shape index: {}]   ;;  %s1710_s10 = inlined_call_operand.vmem [shape: f32[1,32], index: 10, kind: input, shape index: {}]   ;;  %s1711_s11 = inlined_call_operand.vmem [shape: f32[32,32], index: 11, kind: input, shape index: {}]   ;;  %s1712_s12 = inlined_call_operand.vmem [shape: f32[1,32], index: 12, kind: input, shape index: {}]   ;;  %s1713_s13 = inlined_call_operand.vmem [shape: f32[32,128], index: 13, kind: input, shape index: {}]   ;;  %s1714_s14 = inlined_call_operand.vmem [shape: f32[1,128], index: 14, kind: input, shape index: {}]   ;;  %s1715_s15 = inlined_call_operand.vmem [shape: f32[128,32], index: 15, kind: input, shape index: {}]   ;;  %s1716_s16 = inlined_call_operand.vmem [shape: f32[1,32], index: 16, kind: input, shape index: {}]   ;;  %s1717_s17 = inlined_call_operand.hbm [shape: f32[16,32], index: 17, kind: output, shape index: {}]  }
   0x1   :  { %1718 = sst [smem:[#allocation12_spill]] %s1700_s0 }
   0x2   :  { %1719 = sst [smem:[#allocation13_spill]] %s1701_s1 }
   0x3   :  { %22 = vsyncpa [#allocation3], 0 }
   0x4   :  { %23 = vsyncpa [#allocation6], 0  ;;  %s1720_s26 = sld [smem:[#allocation13_spill]] }
   0xa   :  { %s43_s27 = sshll.u32 %s1720_s26, 4  ;;  %s44_s27 = int_to_ptr.hbm [resolvable:$true] %s43_s27 }
   0xb   :  { %24 = vsyncpa [#allocation4], 0  ;;  %s1313_s28 = smov [#allocation5]   ;;  %s1721_s18 = sld [smem:[#allocation12_spill]] }
   0xc   :  { %s45_s29 = sshll.u32 %s1313_s28, 4  ;;  %s1314_s1 = smov [#allocation2]   ;;  %s46_s29 = int_to_ptr.vmem [resolvable:$true] %s45_s29 }
   0xd   :  { %48 = dma.hbm_to_vmem [thread:$0]  %s44_s27, 16, %s46_s29, [#allocation6]  }
   0xe   :  { %s31_s20 = sshll.u32 %s1314_s1, 4  ;;  %s1315_s21 = smov 128   ;;  %s32_s20 = int_to_ptr.vmem [resolvable:$true] %s31_s20 }
   0xf   :  { %s1316_s22 = smov 8   ;;  %s56_s25 = sshll.u32 %s1703_s3, 4  ;;  %s57_s25 = int_to_ptr.hbm [resolvable:$true] %s56_s25 }
  0x10   :  { %s1317_s26 = smov [#allocation7]  }
  0x11   :  { %s29_s19 = sshll.u32 %s1721_s18, 4  ;;  %s58_s28 = sshll.u32 %s1317_s26, 4  ;;  %s30_s19 = int_to_ptr.hbm [resolvable:$true] %s29_s19  ;;  %s59_s28 = int_to_ptr.vmem [resolvable:$true] %s58_s28 }
  0x12   :  { %37 = dma.hbm_to_vmem [thread:$0]  %s30_s19, 256, %s32_s20, [#allocation3], %s1315_s21, %s1315_s21, %s1316_s22  }
  0x13   :  { %61 = dma.hbm_to_vmem [thread:$0]  %s57_s25, 16, %s59_s28, [#allocation6]  }
  0x14   :  { %1307 = dma.done.wait [#allocation3], 256  }
  0x15   :  { %1308 = vsyncadd [#allocation3], 4294967040 }
  0x16   :  { %1309 = dma.done.wait [#allocation6], 32  }
  0x17   :  { %1310 = vsyncadd [#allocation6], 4294967264  ;;  %vm104_vm0 = vcmask 261120   ;;  %v1428_v0 = vld [vmem:[#allocation2] sm:$0xff]  ;;  %v1432_v2 = vld [vmem:[#allocation2 + $0x8] sm:$0xff]  ;;  %v1318_v4 = vmov 32.0  }
  0x18   :  { %v105_v1 = vsel %vm104_vm0, %v1428_v0, 0.0  ;;  %v108_v3 = vsel %vm104_vm0, %v1432_v2, 0.0  ;;  %1161 = vrcp.f32 %v1318_v4  ;;  %v169_v21 = vld [vmem:[%s1705_s5 + $0x18] sm:$0xff]  ;;  %v168_v24 = vld [vmem:[%s1705_s5 + $0x10] sm:$0xff]  ;;  %v167_v27 = vld [vmem:[%s1705_s5 + $0x8] sm:$0xff]  ;;  %vm321_vm8 = vcmask 64512  }
  0x19   :  { %106 = vadd.xlane.f32.xlu0 %v105_v1  ;;  %v208_v22 = vld [vmem:[%s1707_s7 + $0x18] sm:$0xff]  ;;  %192 = vmatpush.msra.mxu0 %v169_v21  ;;  %v207_v25 = vld [vmem:[%s1707_s7 + $0x10] sm:$0xff]  ;;  %v206_v28 = vld [vmem:[%s1707_s7 + $0x8] sm:$0xff]  ;;  %s1319_s26 = smov 120   ;;  %s1320_s28 = smov 104   ;;  %vm812_vm10 = vcmask 130048  }
  0x1a   :  { %v239_v23 = vld [vmem:[%s1709_s9 + $0x18] sm:$0xff]  ;;  %225 = vmatpush.msra.mxu1 %v208_v22  ;;  %v238_v26 = vld [vmem:[%s1709_s9 + $0x10] sm:$0xff]  ;;  %v237_v29 = vld [vmem:[%s1709_s9 + $0x8] sm:$0xff]  ;;  %s1324_s27 = smov 16   ;;  %vm815_vm11 = vcmask 195584   ;;  %s1325_s19 = smov [#allocation8]  }
  0x1b   :  { %256 = vmatpush.msra.mxu2 %v239_v23  ;;  %193 = vmatpush.msra.mxu0 %v168_v24  ;;  %v166_v30 = vld [vmem:[%s1705_s5] sm:$0xff]  ;;  %v1151_v47 = vld [vmem:[#allocation5] ss:$0 sm:$0xff]  ;;  %s1083_s1 = sshll.u32 %s1325_s19, 4  ;;  %s1085_s23 = sshll.u32 %s1717_s17, 4  ;;  %s1084_s1 = int_to_ptr.vmem [resolvable:$true] %s1083_s1  ;;  %s1086_s23 = int_to_ptr.hbm [resolvable:$true] %s1085_s23 }
  0x1c   :  { %226 = vmatpush.msra.mxu1 %v207_v25  ;;  %v205_v31 = vld [vmem:[%s1707_s7] sm:$0xff] }
  0x1d   :  { %257 = vmatpush.msra.mxu2 %v238_v26  ;;  %194 = vmatpush.msra.mxu0 %v167_v27  ;;  %v236_v32 = vld [vmem:[%s1709_s9] sm:$0xff] }
  0x1e   :  { %v1162_v5 = vpop.eup %1161  ;;  %227 = vmatpush.msra.mxu1 %v206_v28  ;;  %v1152_v51 = vld [vmem:[%s1702_s2] ss:$0 sm:$0xff]  ;;  %v1322_v28 = vmov -1e+30  }
  0x1f   :  { %v112_v6 = vmul.f32 32.0, %v1162_v5  ;;  %vm116_vm1 = vweird.f32 %v1162_v5  ;;  %258 = vmatpush.msra.mxu2 %v237_v29  ;;  %195 = vmatpush.msra.mxu0 %v166_v30  ;;  %v1153_v61 = vld [vmem:[%s1706_s6] ss:$0 sm:$0xff]  ;;  %s1321_s6 = smov 112  }
  0x20   :  { %228 = vmatpush.msra.mxu1 %v205_v31  ;;  %v1154_v62 = vld [vmem:[%s1708_s8] ss:$0 sm:$0xff] }
  0x21   :  { %109 = vadd.xlane.f32.xlu0 %v108_v3  ;;  %v113_v7 = vsub.f32 1.0, %v112_v6  ;;  %259 = vmatpush.msra.mxu2 %v236_v32 }
  0x23   :  { %v114_v8 = vmul.f32 %v1162_v5, %v113_v7 }
  0x25   :  { %v115_v9 = vadd.f32 %v1162_v5, %v114_v8 }
  0x27   :  { %v1436_v10 = vsel %vm116_vm1, %v1162_v5, %v115_v9 }
  0x8c   :  { %v107_v11 = vpop.xlane.xlu0 %106 }
  0x8d   :  { %v118_v12 = vmul.f32 %v1436_v10, %v107_v11 }
  0x8f   :  { %v120_v13 = vsub.f32 %v1428_v0, %v118_v12 }
  0x91   :  { %v122_v14 = vmul.f32 %v120_v13, %v120_v13 }
  0x93   :  { %v124_v15 = vsel %vm104_vm0, %v122_v14, 0.0 }
  0x94   :  { %125 = vadd.xlane.f32.xlu1 %v124_v15  ;;  %v110_v16 = vpop.xlane.xlu0 %109 }
  0x95   :  { %v119_v17 = vmul.f32 %v1436_v10, %v110_v16 }
  0x97   :  { %v1443_v18 = vsub.f32 %v1432_v2, %v119_v17  ;;  %v1155_v17 = vld [vmem:[%s1710_s10] ss:$0 sm:$0xff]  ;;  %s1323_s10 = smov 24  }
  0x99   :  { %v123_v19 = vmul.f32 %v1443_v18, %v1443_v18 }
  0x9b   :  { %v127_v20 = vsel %vm104_vm0, %v123_v19, 0.0 }
  0x9c   :  { %128 = vadd.xlane.f32.xlu1 %v127_v20  ;;  %v315_v20 = vlaneseq }
  0x9e   :  { %v316_v24 = vshrl.u32 %v315_v20, 7  ;;  %v318_v25 = vand.u32 127, %v315_v20 }
  0xa0   :  { %vm319_vm9 = vcmp.le.s32.totalorder %v318_v25, %v316_v24 }
  0xa1   :  { %v320_v29 = vsel %vm319_vm9, 0.0, %v1322_v28 }
 0x107   :  { %v126_v33 = vpop.xlane.xlu1 %125 }
 0x108   :  { %v130_v34 = vmul.f32 %v126_v33, %v1436_v10 }
 0x10a   :  { %v132_v35 = vadd.f32 1e-05, %v130_v34 }
 0x10c   :  { %1163 = vrsqrt.f32 %v132_v35  ;;  %vm140_vm3 = vweird.f32 %v132_v35 }
 0x10f   :  { %v129_v36 = vpop.xlane.xlu1 %128 }
 0x110   :  { %v131_v37 = vmul.f32 %v129_v36, %v1436_v10 }
 0x112   :  { %v1164_v38 = vpop.eup %1163  ;;  %v133_v39 = vadd.f32 1e-05, %v131_v37 }
 0x113   :  { %v135_v40 = vmul.f32 %v1164_v38, %v132_v35  ;;  %vm141_vm2 = vweird.f32 %v1164_v38 }
 0x114   :  { %1165 = vrsqrt.f32 %v133_v39  ;;  %vm142_vm4 = vmor %vm140_vm3, %vm141_vm2  ;;  %vm150_vm5 = vweird.f32 %v133_v39 }
 0x115   :  { %v136_v41 = vmul.f32 %v1164_v38, %v135_v40 }
 0x117   :  { %v137_v42 = vmul.f32 0.5, %v136_v41 }
 0x119   :  { %v138_v43 = vsub.f32 1.5, %v137_v42 }
 0x11a   :  { %v1166_v44 = vpop.eup %1165 }
 0x11b   :  { %v139_v45 = vmul.f32 %v1164_v38, %v138_v43  ;;  %v145_v46 = vmul.f32 %v1166_v44, %v133_v39  ;;  %vm151_vm6 = vweird.f32 %v1166_v44 }
 0x11c   :  { %vm152_vm7 = vmor %vm150_vm5, %vm151_vm6 }
 0x11d   :  { %v143_v48 = vsel %vm142_vm4, %v1164_v38, %v139_v45  ;;  %v146_v49 = vmul.f32 %v1166_v44, %v145_v46 }
 0x11e   :  { %v154_v50 = vmul.f32 %v143_v48, %v120_v13 }
 0x11f   :  { %v147_v52 = vmul.f32 0.5, %v146_v49 }
 0x120   :  { %v159_v53 = vmul.f32 %v1151_v47, %v154_v50 }
 0x121   :  { %v148_v54 = vsub.f32 1.5, %v147_v52 }
 0x122   :  { %v164_v55 = vadd.f32 %v1152_v51, %v159_v53 }
 0x123   :  { %v149_v56 = vmul.f32 %v1166_v44, %v148_v54 }
 0x124   :  { %1099 = vmatmul.msk.f32.vlgmr.msra.gmra.mxu0 %vm104_vm0, %v164_v55  ;;  %1101 = vmatmul.msk.f32.vlgmr.msra.gmra.mxu1 %vm104_vm0, %v164_v55 }
 0x125   :  { %v153_v57 = vsel %vm152_vm7, %v1166_v44, %v149_v56  ;;  %1103 = vmatmul.msk.f32.vlgmr.msra.gmra.mxu2 %vm104_vm0, %v164_v55 }
 0x126   :  { %v155_v58 = vmul.f32 %v153_v57, %v1443_v18 }
 0x128   :  { %v160_v59 = vmul.f32 %v1151_v47, %v155_v58 }
 0x12a   :  { %v165_v60 = vadd.f32 %v1152_v51, %v160_v59 }
 0x12c   :  { %1100 = vmatmul.msk.f32.gmra.mxu0 %vm104_vm0, %v165_v60  ;;  %1102 = vmatmul.msk.f32.gmra.mxu1 %vm104_vm0, %v165_v60 }
 0x12d   :  { %1104 = vmatmul.msk.f32.gmra.mxu2 %vm104_vm0, %v165_v60 }
 0x1a1   :  { %v197_v63 = vpop.f32.mrf.mxu0  ;;  %v230_v1 = vpop.f32.mrf.mxu1 }
 0x1a2   :  { %v198_v3 = vadd.f32 %v1153_v61, %v197_v63  ;;  %v231_v4 = vadd.f32 %v1154_v62, %v230_v1 }
 0x1a4   :  { %v203_v5 = vmul.f32 0.35355338, %v198_v3  ;;  %283 = vrot.lane.b32.xlu2 %v231_v4, %s1319_s26  ;;  %1105 = vmatpush.xpose.msk.msrb.mxu0 %vm321_vm8, %v231_v4 }
 0x1a6   :  { %269 = vrot.lane.b32.xlu0 %v203_v5, %s1319_s26  ;;  %277 = vrot.lane.b32.xlu1 %v203_v5, %s1320_s28 }
 0x1a7   :  { %1106 = vmatmul.msk.f32.vlgmr.msrb.gmra.mxu0 %vm321_vm8, %v203_v5 }
 0x1a8   :  { %v261_v14 = vpop.f32.mrf.mxu2 }
 0x1a9   :  { %v200_v6 = vpop.f32.mrf.mxu0  ;;  %v233_v7 = vpop.f32.mrf.mxu1  ;;  %v262_v21 = vadd.f32 %v1155_v17, %v261_v14 }
 0x1aa   :  { %v201_v8 = vadd.f32 %v1153_v61, %v200_v6  ;;  %v234_v9 = vadd.f32 %v1154_v62, %v233_v7 }
 0x1ac   :  { %v204_v11 = vmul.f32 0.35355338, %v201_v8  ;;  %291 = vrot.lane.b32.xlu2 %v231_v4, %s1320_s28  ;;  %1107 = vmatpush.xpose.msk.msra.mxu0 %vm321_vm8, %v234_v9 }
 0x1ae   :  { %285 = vrot.lane.b32.xlu0 %v234_v9, %s1319_s26  ;;  %271 = vrot.lane.b32.xlu1 %v204_v11, %s1319_s26 }
 0x1af   :  { %1108 = vmatmul.msk.f32.vlgmr.msra.gmra.mxu0 %vm321_vm8, %v204_v11 }
 0x1b0   :  { %v264_v16 = vpop.f32.mrf.mxu2 }
 0x1b1   :  { %v1524_v18 = vadd.f32 %v1155_v17, %v264_v16 }
 0x1b3   :  { %v1146_v60 = vpack.i.bf16 %v1524_v18, %v262_v21 }
 0x1b4   :  { %287 = vrot.lane.b32.xlu2 %v231_v4, %s1321_s6 }
 0x1b6   :  { %293 = vrot.lane.b32.xlu0 %v234_v9, %s1320_s28 }
 0x1bc   :  { %289 = vrot.lane.b32.xlu2 %v234_v9, %s1321_s6 }
 0x1c4   :  { %275 = vrot.lane.b32.xlu2 %v204_v11, %s1321_s6 }
 0x1cc   :  { %273 = vrot.lane.b32.xlu2 %v203_v5, %s1321_s6 }
 0x1d4   :  { %279 = vrot.lane.b32.xlu2 %v204_v11, %s1320_s28 }
 0x1fe   :  { %v284_v12 = vpop.permute.xlu2 %283 }
 0x1ff   :  { %1109 = vmatpush.xpose.msk.msrb.mxu1 %vm321_vm8, %v284_v12 }
 0x206   :  { %v292_v13 = vpop.permute.xlu2 %291 }
 0x207   :  { %1117 = vmatpush.xpose.msk.msra.mxu3 %vm321_vm8, %v292_v13 }
 0x20e   :  { %v288_v15 = vpop.permute.xlu2 %287 }
 0x20f   :  { %1113 = vmatpush.xpose.msk.msra.mxu1 %vm321_vm8, %v288_v15 }
 0x216   :  { %v290_v19 = vpop.permute.xlu2 %289 }
 0x217   :  { %1115 = vmatpush.xpose.msk.msrb.mxu2 %vm321_vm8, %v290_v19 }
 0x218   :  { %v278_v22 = vpop.permute.xlu1 %277  ;;  %v270_v23 = vpop.permute.xlu0 %269 }
 0x219   :  { %1110 = vmatmul.msk.f32.vlgmr.msrb.gmra.mxu1 %vm321_vm8, %v270_v23  ;;  %1118 = vmatmul.msk.f32.vlgmr.msra.gmra.mxu3 %vm321_vm8, %v278_v22 }
 0x21a   :  { %620 = vmatpush.msrb.mxu1 %v262_v21 }
 0x21b   :  { %643 = vmatpush.msra.mxu2 %v1524_v18 }
 0x21e   :  { %v276_v26 = vpop.permute.xlu2 %275 }
 0x21f   :  { %1116 = vmatmul.msk.f32.vlgmr.msrb.gmra.mxu2 %vm321_vm8, %v276_v26 }
 0x220   :  { %v286_v27 = vpop.permute.xlu0 %285  ;;  %v272_v30 = vpop.permute.xlu1 %271 }
 0x221   :  { %1111 = vmatpush.xpose.msk.msrb.mxu0 %vm321_vm8, %v286_v27 }
 0x224   :  { %v343_v31 = vpop.f32.mrf.mxu0  ;;  %1112 = vmatmul.msk.f32.vlgmr.msrb.gmra.mxu0 %vm321_vm8, %v272_v30 }
 0x225   :  { %v344_v32 = vadd.f32 %v343_v31, %v320_v29 }
 0x226   :  { %v274_v33 = vpop.permute.xlu2 %273 }
 0x227   :  { %1114 = vmatmul.msk.f32.vlgmr.msra.gmra.mxu1 %vm321_vm8, %v274_v33  ;;  %v514_v34 = vsel %vm321_vm8, %v344_v32, -inf }
 0x228   :  { %515 = vmax.xlane.f32.xlu0 %v514_v34  ;;  %v294_v35 = vpop.permute.xlu0 %293 }
 0x229   :  { %1119 = vmatpush.xpose.msk.msra.mxu0 %vm321_vm8, %v294_v35 }
 0x22c   :  { %v367_v36 = vpop.f32.mrf.mxu0 }
 0x22d   :  { %v368_v37 = vadd.f32 %v367_v36, %v320_v29 }
 0x22e   :  { %v280_v38 = vpop.permute.xlu2 %279 }
 0x22f   :  { %1120 = vmatmul.msk.f32.vlgmr.msra.gmra.mxu0 %vm321_vm8, %v280_v38  ;;  %v517_v39 = vsel %vm321_vm8, %v368_v37, -inf }
 0x230   :  { %518 = vmax.xlane.f32.xlu2 %v517_v39 }
 0x296   :  { %v391_v40 = vpop.f32.mrf.mxu1 }
 0x297   :  { %v392_v41 = vadd.f32 %v391_v40, %v320_v29 }
 0x299   :  { %v520_v42 = vsel %vm321_vm8, %v392_v41, -inf }
 0x29a   :  { %521 = vmax.xlane.f32.xlu1 %v520_v42 }
 0x29b   :  { %v516_v43 = vpop.xlane.xlu0 %515 }
 0x29c   :  { %v538_v44 = vsub.f32 %v344_v32, %v516_v43  ;;  %v487_v45 = vpop.f32.mrf.mxu3 }
 0x29d   :  { %v488_v46 = vadd.f32 %v487_v45, %v320_v29 }
 0x29e   :  { %v546_v47 = vmul.f32 1.442695, %v538_v44 }
 0x29f   :  { %v532_v49 = vsel %vm321_vm8, %v488_v46, -inf }
 0x2a0   :  { %1167 = vpow2.f32 %v546_v47 }
 0x2a1   :  { %v415_v48 = vpop.f32.mrf.mxu0 }
 0x2a2   :  { %v416_v50 = vadd.f32 %v415_v48, %v320_v29  ;;  %533 = vmax.xlane.f32.xlu1 %v532_v49  ;;  %v463_v57 = vpop.f32.mrf.mxu2 }
 0x2a3   :  { %v464_v58 = vadd.f32 %v463_v57, %v320_v29  ;;  %v519_v61 = vpop.xlane.xlu2 %518 }
 0x2a4   :  { %v439_v51 = vpop.f32.mrf.mxu1  ;;  %v523_v52 = vsel %vm321_vm8, %v416_v50, -inf  ;;  %v539_v62 = vsub.f32 %v368_v37, %v519_v61 }
 0x2a5   :  { %v440_v53 = vadd.f32 %v439_v51, %v320_v29  ;;  %524 = vmax.xlane.f32.xlu2 %v523_v52  ;;  %v529_v59 = vsel %vm321_vm8, %v464_v58, -inf }
 0x2a6   :  { %v1168_v54 = vpop.eup %1167  ;;  %v548_v1 = vmul.f32 1.442695, %v539_v62 }
 0x2a7   :  { %v526_v55 = vsel %vm321_vm8, %v440_v53, -inf  ;;  %v562_v56 = vsel %vm321_vm8, %v1168_v54, 0.0 }
 0x2a8   :  { %527 = vmax.xlane.f32.xlu0 %v526_v55  ;;  %1169 = vpow2.f32 %v548_v1 }
 0x2aa   :  { %563 = vadd.xlane.f32.xlu1 %v562_v56 }
 0x2ac   :  { %v511_v63 = vpop.f32.mrf.mxu0 }
 0x2ad   :  { %v512_v3 = vadd.f32 %v511_v63, %v320_v29 }
 0x2ae   :  { %v1549_v5 = vpop.eup %1169 }
 0x2af   :  { %v535_v4 = vsel %vm321_vm8, %v512_v3, -inf  ;;  %v565_v6 = vsel %vm321_vm8, %v1549_v5, 0.0 }
 0x2b2   :  { %530 = vmax.xlane.f32.xlu1 %v529_v59 }
 0x2bc   :  { %1147 = vrot.lane.b32.xlu0 %v1146_v60, %s1321_s6 }
 0x2bd   :  { %309 = vrot.lane.b32.xlu2 %v262_v21, %s1320_s28 }
 0x2cb   :  { %297 = vrot.lane.b32.xlu1 %v262_v21, %s1319_s26 }
 0x2e6   :  { %536 = vmax.xlane.f32.xlu0 %v535_v4 }
 0x2ee   :  { %566 = vadd.xlane.f32.xlu0 %v565_v6 }
 0x30d   :  { %v522_v7 = vpop.xlane.xlu1 %521 }
 0x30e   :  { %v540_v8 = vsub.f32 %v392_v41, %v522_v7 }
 0x310   :  { %v550_v9 = vmul.f32 1.442695, %v540_v8 }
 0x312   :  { %1171 = vpow2.f32 %v550_v9 }
 0x315   :  { %v534_v11 = vpop.xlane.xlu1 %533 }
 0x316   :  { %v544_v12 = vsub.f32 %v488_v46, %v534_v11 }
 0x318   :  { %v1172_v13 = vpop.eup %1171  ;;  %v558_v14 = vmul.f32 1.442695, %v544_v12  ;;  %v525_v15 = vpop.xlane.xlu2 %524 }
 0x319   :  { %v541_v16 = vsub.f32 %v416_v50, %v525_v15  ;;  %v568_v17 = vsel %vm321_vm8, %v1172_v13, 0.0 }
 0x31a   :  { %1173 = vpow2.f32 %v558_v14  ;;  %569 = vadd.xlane.f32.xlu2 %v568_v17  ;;  %v820_v17 = vld [vmem:[%s1711_s11 + $0x10] sm:$0xff] }
 0x31b   :  { %v552_v19 = vmul.f32 1.442695, %v541_v16  ;;  %v528_v20 = vpop.xlane.xlu0 %527  ;;  %v821_v16 = vld [vmem:[%s1711_s11 + $0x18] sm:$0xff] }
 0x31c   :  { %v542_v21 = vsub.f32 %v440_v53, %v528_v20  ;;  %v818_v20 = vld [vmem:[%s1711_s11] sm:$0xff] }
 0x31d   :  { %v564_v22 = vpop.xlane.xlu1 %563 }
 0x31e   :  { %v554_v23 = vmul.f32 1.442695, %v542_v21  ;;  %1175 = vrcp.f32 %v564_v22 }
 0x31f   :  { %1177 = vpow2.f32 %v552_v19  ;;  %v819_v19 = vld [vmem:[%s1711_s11 + $0x8] sm:$0xff] }
 0x320   :  { %v1174_v24 = vpop.eup %1173  ;;  %1179 = vpow2.f32 %v554_v23  ;;  %v310_v41 = vpop.permute.xlu2 %309 }
 0x321   :  { %v580_v25 = vsel %vm321_vm8, %v1174_v24, 0.0 }
 0x322   :  { %581 = vadd.xlane.f32.xlu2 %v580_v25 }
 0x324   :  { %v1176_v26 = vpop.eup %1175 }
 0x325   :  { %v1178_v27 = vpop.eup %1177  ;;  %v594_v28 = vmul.f32 %v1176_v26, %v1168_v54  ;;  %v531_v29 = vpop.xlane.xlu1 %530 }
 0x326   :  { %v1180_v30 = vpop.eup %1179  ;;  %v543_v31 = vsub.f32 %v464_v58, %v531_v29  ;;  %v571_v34 = vsel %vm321_vm8, %v1178_v27, 0.0 }
 0x327   :  { %1121 = vmatmul.msk.f32.vlgmr.msrb.gmra.mxu1 %vm321_vm8, %v594_v28  ;;  %v574_v32 = vsel %vm321_vm8, %v1180_v30, 0.0 }
 0x328   :  { %v556_v33 = vmul.f32 1.442695, %v543_v31  ;;  %575 = vadd.xlane.f32.xlu0 %v574_v32 }
 0x32a   :  { %1181 = vpow2.f32 %v556_v33  ;;  %572 = vadd.xlane.f32.xlu2 %v571_v34  ;;  %v1156_v33 = vld [vmem:[%s1712_s12] ss:$0 sm:$0xff] }
 0x32e   :  { %v1148_v35 = vpop.permute.xlu0 %1147 }
 0x32f   :  { %v1150_v36 = vunpack.i.h.bf16 %v1148_v35  ;;  %v1149_v37 = vunpack.i.l.bf16 %v1148_v35 }
 0x330   :  { %v1182_v38 = vpop.eup %1181 }
 0x331   :  { %712 = vmatpush.msra.mxu1 %v1149_v37  ;;  %735 = vmatpush.msrb.mxu2 %v1150_v36  ;;  %v577_v39 = vsel %vm321_vm8, %v1182_v38, 0.0 }
 0x332   :  { %578 = vadd.xlane.f32.xlu0 %v577_v39 }
 0x333   :  { %840 = vmatpush.msrb.mxu1 %v821_v16 }
 0x335   :  { %841 = vmatpush.msrb.mxu1 %v820_v17 }
 0x337   :  { %842 = vmatpush.msrb.mxu1 %v819_v19 }
 0x339   :  { %843 = vmatpush.msrb.mxu1 %v818_v20 }
 0x33d   :  { %v298_v40 = vpop.permute.xlu1 %297 }
 0x33e   :  { %666 = vmatpush.msrb.mxu3 %v298_v40 }
 0x340   :  { %758 = vmatpush.msra.mxu3 %v310_v41 }
 0x342   :  { %299 = vrot.lane.b32.xlu2 %v1524_v18, %s1319_s26 }
 0x346   :  { %311 = vrot.lane.b32.xlu0 %v1524_v18, %s1320_s28 }
 0x359   :  { %v537_v42 = vpop.xlane.xlu0 %536 }
 0x35a   :  { %v545_v43 = vsub.f32 %v512_v3, %v537_v42 }
 0x35c   :  { %v560_v44 = vmul.f32 1.442695, %v545_v43 }
 0x35e   :  { %1183 = vpow2.f32 %v560_v44 }
 0x361   :  { %v567_v45 = vpop.xlane.xlu0 %566 }
 0x362   :  { %1185 = vrcp.f32 %v567_v45 }
 0x364   :  { %v1184_v46 = vpop.eup %1183 }
 0x365   :  { %v583_v47 = vsel %vm321_vm8, %v1184_v46, 0.0 }
 0x366   :  { %584 = vadd.xlane.f32.xlu1 %v583_v47 }
 0x368   :  { %v1186_v48 = vpop.eup %1185 }
 0x369   :  { %v595_v49 = vmul.f32 %v1186_v48, %v1549_v5 }
 0x36b   :  { %1122 = vmatmul.msk.f32.vlgmr.msra.gmra.mxu2 %vm321_vm8, %v595_v49 }
 0x38d   :  { %v570_v50 = vpop.xlane.xlu2 %569 }
 0x38e   :  { %1187 = vrcp.f32 %v570_v50  ;;  %v918_v50 = vld [vmem:[%s1713_s13 + $0x18] sm:$0xff] }
 0x38f   :  { %941 = vmatpush.msra.mxu2 %v918_v50 }
 0x394   :  { %v1188_v51 = vpop.eup %1187 }
 0x395   :  { %v582_v52 = vpop.xlane.xlu2 %581  ;;  %v596_v18 = vmul.f32 %v1188_v51, %v1172_v13  ;;  %v917_v51 = vld [vmem:[%s1713_s13 + $0x10] sm:$0xff] }
 0x396   :  { %1189 = vrcp.f32 %v582_v52  ;;  %942 = vmatpush.msra.mxu2 %v917_v51  ;;  %v916_v52 = vld [vmem:[%s1713_s13 + $0x8] sm:$0xff] }
 0x397   :  { %1123 = vmatmul.msk.f32.vlgmr.msrb.gmra.mxu3 %vm321_vm8, %v596_v18  ;;  %v915_v18 = vld [vmem:[%s1713_s13] sm:$0xff] }
 0x398   :  { %943 = vmatpush.msra.mxu2 %v916_v52 }
 0x39a   :  { %944 = vmatpush.msra.mxu2 %v915_v18 }
 0x39b   :  { %v576_v53 = vpop.xlane.xlu0 %575 }
 0x39c   :  { %v1190_v54 = vpop.eup %1189  ;;  %1191 = vrcp.f32 %v576_v53 }
 0x39d   :  { %v600_v55 = vmul.f32 %v1190_v54, %v1174_v24  ;;  %v573_v56 = vpop.xlane.xlu2 %572 }
 0x39e   :  { %1193 = vrcp.f32 %v573_v56 }
 0x39f   :  { %1127 = vmatmul.msk.f32.vlgmr.msra.gmra.mxu3 %vm321_vm8, %v600_v55 }
 0x3a2   :  { %v1192_v57 = vpop.eup %1191 }
 0x3a3   :  { %v598_v58 = vmul.f32 %v1192_v57, %v1180_v30 }
 0x3a4   :  { %v1194_v59 = vpop.eup %1193  ;;  %v622_v7 = vpop.f32.mrf.mxu1 }
 0x3a5   :  { %v597_v60 = vmul.f32 %v1194_v59, %v1178_v27  ;;  %v300_v61 = vpop.permute.xlu2 %299  ;;  %v579_v62 = vpop.xlane.xlu0 %578  ;;  %1125 = vmatmul.msk.f32.vlgmr.msra.gmra.mxu1 %vm321_vm8, %v598_v58 }
 0x3a6   :  { %1195 = vrcp.f32 %v579_v62  ;;  %689 = vmatpush.msrb.mxu0 %v300_v61  ;;  %v1157_v62 = vld [vmem:[#allocation7] ss:$0 sm:$0xff] }
 0x3a7   :  { %1124 = vmatmul.msk.f32.vlgmr.msrb.gmra.mxu0 %vm321_vm8, %v597_v60 }
 0x3ac   :  { %v1196_v63 = vpop.eup %1195 }
 0x3ad   :  { %v599_v1 = vmul.f32 %v1196_v63, %v1182_v38 }
 0x3af   :  { %1126 = vmatmul.msk.f32.vlgmr.msrb.gmra.mxu2 %vm321_vm8, %v599_v1 }
 0x3b8   :  { %v312_v3 = vpop.permute.xlu0 %311 }
 0x3b9   :  { %781 = vmatpush.msra.mxu0 %v312_v3  ;;  %v1158_v3 = vld [vmem:[%s1704_s4] ss:$0 sm:$0xff] }
 0x3d9   :  { %v585_v4 = vpop.xlane.xlu1 %584 }
 0x3da   :  { %1197 = vrcp.f32 %v585_v4 }
 0x3e0   :  { %v1198_v5 = vpop.eup %1197 }
 0x3e1   :  { %v601_v6 = vmul.f32 %v1198_v5, %v1184_v46 }
 0x3e3   :  { %1128 = vmatmul.msk.f32.vlgmr.msra.gmra.mxu0 %vm321_vm8, %v601_v6 }
 0x3ee   :  { %v645_v12 = vpop.f32.mrf.mxu2 }
 0x41a   :  { %v668_v8 = vpop.f32.mrf.mxu3 }
 0x41b   :  { %788 = vrot.lane.b32.xlu2 %v668_v8, %s1316_s22 }
 0x422   :  { %v714_v9 = vpop.f32.mrf.mxu1  ;;  %v760_v11 = vpop.f32.mrf.mxu3 }
 0x423   :  { %804 = vrot.lane.b32.xlu2 %v760_v11, %s1323_s10  ;;  %796 = vrot.lane.b32.xlu0 %v714_v9, %s1324_s27 }
 0x424   :  { %v691_v13 = vpop.f32.mrf.mxu0 }
 0x42b   :  { %790 = vrot.lane.b32.xlu0 %v691_v13, %s1316_s22 }
 0x432   :  { %v737_v14 = vpop.f32.mrf.mxu2 }
 0x433   :  { %798 = vrot.lane.b32.xlu2 %v737_v14, %s1324_s27 }
 0x460   :  { %v783_v15 = vpop.f32.mrf.mxu0 }
 0x461   :  { %806 = vrot.lane.b32.xlu0 %v783_v15, %s1323_s10 }
 0x475   :  { %v789_v21 = vpop.permute.xlu2 %788 }
 0x476   :  { %v810_v22 = vsel %vm321_vm8, %v622_v7, %v789_v21  ;;  %v1046_v21 = vld [vmem:[%s1715_s15 + $0x70] sm:$0xff] }
 0x47d   :  { %v805_v24 = vpop.permute.xlu2 %804 }
 0x48d   :  { %v799_v29 = vpop.permute.xlu2 %798 }
 0x495   :  { %v797_v23 = vpop.permute.xlu0 %796 }
 0x496   :  { %v813_v25 = vsel %vm812_vm10, %v810_v22, %v797_v23  ;;  %v1637_v22 = vld [vmem:[%s1714_s14] ss:$0 sm:$0xff]  ;;  %v1045_v23 = vld [vmem:[%s1715_s15 + $0x68] sm:$0xff] }
 0x497   :  { %v816_v26 = vsel %vm815_vm11, %v813_v25, %v805_v24  ;;  %v1044_v25 = vld [vmem:[%s1715_s15 + $0x60] sm:$0xff] }
 0x498   :  { %1129 = vmatmul.msk.f32.vlgmr.msrb.gmra.mxu1 %vm104_vm0, %v816_v26 }
 0x49d   :  { %v791_v27 = vpop.permute.xlu0 %790 }
 0x49e   :  { %v811_v28 = vsel %vm321_vm8, %v645_v12, %v791_v27  ;;  %v1043_v27 = vld [vmem:[%s1715_s15 + $0x58] sm:$0xff] }
 0x49f   :  { %v814_v31 = vsel %vm812_vm10, %v811_v28, %v799_v29  ;;  %v1042_v29 = vld [vmem:[%s1715_s15 + $0x50] sm:$0xff] }
 0x4d3   :  { %v807_v30 = vpop.permute.xlu0 %806 }
 0x4d4   :  { %v817_v32 = vsel %vm815_vm11, %v814_v31, %v807_v30  ;;  %v1041_v31 = vld [vmem:[%s1715_s15 + $0x48] sm:$0xff] }
 0x4d5   :  { %1130 = vmatmul.msk.f32.gmra.mxu1 %vm104_vm0, %v817_v32 }
 0x515   :  { %v845_v34 = vpop.f32.mrf.mxu1 }
 0x516   :  { %v851_v35 = vadd.f32 %v845_v34, %v1428_v0 }
 0x518   :  { %v1594_v36 = vadd.f32 %v1156_v33, %v851_v35  ;;  %v1039_v35 = vld [vmem:[%s1715_s15 + $0x38] sm:$0xff] }
 0x51a   :  { %v861_v37 = vsel %vm104_vm0, %v1594_v36, 0.0 }
 0x51b   :  { %862 = vadd.xlane.f32.xlu1 %v861_v37  ;;  %v1038_v37 = vld [vmem:[%s1715_s15 + $0x30] sm:$0xff] }
 0x552   :  { %v848_v38 = vpop.f32.mrf.mxu1 }
 0x553   :  { %v852_v39 = vadd.f32 %v848_v38, %v1432_v2  ;;  %v1037_v38 = vld [vmem:[%s1715_s15 + $0x28] sm:$0xff] }
 0x555   :  { %v1599_v40 = vadd.f32 %v1156_v33, %v852_v39  ;;  %v1040_v33 = vld [vmem:[%s1715_s15 + $0x40] sm:$0xff] }
 0x556   :  { %v1036_v39 = vld [vmem:[%s1715_s15 + $0x20] sm:$0xff] }
 0x557   :  { %v864_v41 = vsel %vm104_vm0, %v1599_v40, 0.0 }
 0x558   :  { %865 = vadd.xlane.f32.xlu2 %v864_v41 }
 0x58e   :  { %v863_v42 = vpop.xlane.xlu1 %862 }
 0x58f   :  { %v867_v43 = vmul.f32 %v863_v42, %v1436_v10 }
 0x591   :  { %v869_v0 = vsub.f32 %v1594_v36, %v867_v43  ;;  %v1035_v43 = vld [vmem:[%s1715_s15 + $0x18] sm:$0xff] }
 0x593   :  { %v871_v44 = vmul.f32 %v869_v0, %v869_v0 }
 0x595   :  { %v873_v45 = vsel %vm104_vm0, %v871_v44, 0.0  ;;  %v1034_v44 = vld [vmem:[%s1715_s15 + $0x10] sm:$0xff] }
 0x596   :  { %874 = vadd.xlane.f32.xlu0 %v873_v45 }
 0x5cb   :  { %v866_v46 = vpop.xlane.xlu2 %865 }
 0x5cc   :  { %v868_v47 = vmul.f32 %v866_v46, %v1436_v10 }
 0x5ce   :  { %v870_v2 = vsub.f32 %v1599_v40, %v868_v47 }
 0x5d0   :  { %v872_v48 = vmul.f32 %v870_v2, %v870_v2 }
 0x5d2   :  { %v876_v49 = vsel %vm104_vm0, %v872_v48, 0.0  ;;  %v1032_v48 = vld [vmem:[%s1715_s15] sm:$0xff] }
 0x5d3   :  { %877 = vadd.xlane.f32.xlu1 %v876_v49 }
 0x609   :  { %v875_v53 = vpop.xlane.xlu0 %874 }
 0x60a   :  { %v879_v54 = vmul.f32 %v875_v53, %v1436_v10 }
 0x60c   :  { %v881_v55 = vadd.f32 1e-05, %v879_v54 }
 0x60e   :  { %1199 = vrsqrt.f32 %v881_v55  ;;  %vm889_vm13 = vweird.f32 %v881_v55 }
 0x614   :  { %v1200_v56 = vpop.eup %1199 }
 0x615   :  { %v884_v57 = vmul.f32 %v1200_v56, %v881_v55  ;;  %vm890_vm12 = vweird.f32 %v1200_v56 }
 0x616   :  { %vm891_vm14 = vmor %vm889_vm13, %vm890_vm12 }
 0x617   :  { %v885_v58 = vmul.f32 %v1200_v56, %v884_v57 }
 0x619   :  { %v886_v59 = vmul.f32 0.5, %v885_v58 }
 0x61b   :  { %v887_v60 = vsub.f32 1.5, %v886_v59 }
 0x61d   :  { %v888_v61 = vmul.f32 %v1200_v56, %v887_v60 }
 0x61f   :  { %v892_v63 = vsel %vm891_vm14, %v1200_v56, %v888_v61 }
 0x620   :  { %v903_v1 = vmul.f32 %v892_v63, %v869_v0 }
 0x622   :  { %v908_v4 = vmul.f32 %v1157_v62, %v903_v1 }
 0x624   :  { %v913_v5 = vadd.f32 %v1158_v3, %v908_v4 }
 0x626   :  { %1131 = vmatmul.msk.f32.vlgmr.msra.gmra.mxu2 %vm104_vm0, %v913_v5 }
 0x646   :  { %v878_v6 = vpop.xlane.xlu1 %877 }
 0x647   :  { %v880_v7 = vmul.f32 %v878_v6, %v1436_v10  ;;  %v1047_v10 = vld [vmem:[%s1715_s15 + $0x78] sm:$0xff] }
 0x648   :  { %1052 = vmatpush.msrb.mxu3 %v1047_v10 }
 0x649   :  { %v882_v8 = vadd.f32 1e-05, %v880_v7 }
 0x64a   :  { %1053 = vmatpush.msrb.mxu3 %v1046_v21 }
 0x64b   :  { %1201 = vrsqrt.f32 %v882_v8  ;;  %vm899_vm1 = vweird.f32 %v882_v8 }
 0x64c   :  { %1054 = vmatpush.msrb.mxu3 %v1045_v23 }
 0x64e   :  { %1055 = vmatpush.msrb.mxu3 %v1044_v25 }
 0x650   :  { %1056 = vmatpush.msrb.mxu3 %v1043_v27 }
 0x651   :  { %v1202_v9 = vpop.eup %1201 }
 0x652   :  { %v894_v11 = vmul.f32 %v1202_v9, %v882_v8  ;;  %vm900_vm15 = vweird.f32 %v1202_v9  ;;  %1057 = vmatpush.msrb.mxu3 %v1042_v29 }
 0x653   :  { %vm901_vm2 = vmor %vm899_vm1, %vm900_vm15 }
 0x654   :  { %v895_v12 = vmul.f32 %v1202_v9, %v894_v11  ;;  %1058 = vmatpush.msrb.mxu3 %v1041_v31 }
 0x656   :  { %v896_v13 = vmul.f32 0.5, %v895_v12  ;;  %1059 = vmatpush.msrb.mxu3 %v1040_v33 }
 0x658   :  { %v897_v14 = vsub.f32 1.5, %v896_v13  ;;  %1060 = vmatpush.msrb.mxu3 %v1039_v35 }
 0x65a   :  { %v898_v15 = vmul.f32 %v1202_v9, %v897_v14  ;;  %1061 = vmatpush.msrb.mxu3 %v1038_v37 }
 0x65c   :  { %v902_v16 = vsel %vm901_vm2, %v1202_v9, %v898_v15  ;;  %1062 = vmatpush.msrb.mxu3 %v1037_v38 }
 0x65d   :  { %v904_v17 = vmul.f32 %v902_v16, %v870_v2  ;;  %v1033_v2 = vld [vmem:[%s1715_s15 + $0x8] sm:$0xff] }
 0x65e   :  { %1063 = vmatpush.msrb.mxu3 %v1036_v39 }
 0x65f   :  { %v909_v19 = vmul.f32 %v1157_v62, %v904_v17 }
 0x660   :  { %1064 = vmatpush.msrb.mxu3 %v1035_v43 }
 0x661   :  { %v914_v20 = vadd.f32 %v1158_v3, %v909_v19 }
 0x662   :  { %1065 = vmatpush.msrb.mxu3 %v1034_v44 }
 0x663   :  { %1132 = vmatmul.msk.f32.gmra.mxu2 %vm104_vm0, %v914_v20 }
 0x664   :  { %1066 = vmatpush.msrb.mxu3 %v1033_v2  ;;  %v1160_v2 = vld [vmem:[%s1716_s16] ss:$0 sm:$0xff] }
 0x666   :  { %1067 = vmatpush.msrb.mxu3 %v1032_v48 }
 0x6a9   :  { %v946_v24 = vpop.f32.mrf.mxu2 }
 0x6aa   :  { %v1646_v26 = vadd.f32 %v1637_v22, %v946_v24 }
 0x6ac   :  { %v954_v28 = vmul.f32 0.70710677, %v1646_v26  ;;  %v952_v7 = vmul.f32 0.5, %v1646_v26 }
 0x6ae   :  { %v956_v30 = vand.u32 2147483647, %v954_v28  ;;  %vm1022_vm7 = vcmp.ge.f32.partialorder %v954_v28, 0.0 }
 0x6b0   :  { %v958_v32 = vmul.f32 0.3275911, %v956_v30  ;;  %v1010_v18 = vsub.f32 0.0, %v956_v30 }
 0x6b2   :  { %v960_v34 = vadd.f32 1.0, %v958_v32  ;;  %v1012_v55 = vmul.f32 %v1010_v18, %v956_v30 }
 0x6b4   :  { %1203 = vrcp.f32 %v960_v34  ;;  %v973_v45 = vand.u32 2147483648, %v960_v34  ;;  %v971_v47 = vand.u32 2147483647, %v960_v34  ;;  %vm967_vm4 = vweird.f32 %v960_v34 }
 0x6b5   :  { %v1014_v58 = vmul.f32 1.442695, %v1012_v55 }
 0x6b6   :  { %v974_v50 = vor.u32 1.1754944e-38, %v973_v45  ;;  %vm972_vm6 = vcmp.eq.f32.partialorder %v971_v47, 8.507059e+37 }
 0x6b7   :  { %1205 = vpow2.f32 %v1014_v58 }
 0x6ba   :  { %v1204_v41 = vpop.eup %1203 }
 0x6bb   :  { %v963_v42 = vmul.f32 %v1204_v41, %v960_v34  ;;  %vm968_vm3 = vweird.f32 %v1204_v41 }
 0x6bc   :  { %vm969_vm5 = vmor %vm967_vm4, %vm968_vm3 }
 0x6bd   :  { %v964_v0 = vsub.f32 1.0, %v963_v42  ;;  %v1206_v1 = vpop.eup %1205 }
 0x6bf   :  { %v965_v46 = vmul.f32 %v1204_v41, %v964_v0 }
 0x6c1   :  { %v966_v49 = vadd.f32 %v1204_v41, %v965_v46 }
 0x6c3   :  { %v970_v51 = vsel %vm969_vm5, %v1204_v41, %v966_v49 }
 0x6c4   :  { %v975_v52 = vsel %vm972_vm6, %v974_v50, %v970_v51 }
 0x6c5   :  { %v992_v53 = vmul.f32 1.0614054, %v975_v52 }
 0x6c7   :  { %v994_v54 = vadd.f32 -1.4531521, %v992_v53 }
 0x6c9   :  { %v996_v56 = vmul.f32 %v994_v54, %v975_v52 }
 0x6cb   :  { %v998_v57 = vadd.f32 1.4214138, %v996_v56 }
 0x6cd   :  { %v1000_v59 = vmul.f32 %v998_v57, %v975_v52 }
 0x6cf   :  { %v1002_v60 = vadd.f32 -0.28449672, %v1000_v59 }
 0x6d1   :  { %v1004_v61 = vmul.f32 %v1002_v60, %v975_v52 }
 0x6d3   :  { %v1006_v62 = vadd.f32 0.2548296, %v1004_v61 }
 0x6d5   :  { %v1008_v63 = vmul.f32 %v1006_v62, %v975_v52 }
 0x6d7   :  { %v1018_v3 = vmul.f32 %v1206_v1, %v1008_v63 }
 0x6d9   :  { %v1020_v4 = vsub.f32 1.0, %v1018_v3 }
 0x6db   :  { %v1024_v5 = vsub.f32 0.0, %v1020_v4 }
 0x6dd   :  { %v1026_v6 = vsel %vm1022_vm7, %v1020_v4, %v1024_v5 }
 0x6de   :  { %v1028_v8 = vadd.f32 1.0, %v1026_v6 }
 0x6e0   :  { %v1030_v9 = vmul.f32 %v1028_v8, %v952_v7 }
 0x6e2   :  { %1068 = vmatmul.f32.vlgmr.msrb.gmra.mxu3 %v1030_v9 }
 0x6e6   :  { %v949_v11 = vpop.f32.mrf.mxu2 }
 0x6e7   :  { %v950_v12 = vadd.f32 %v1637_v22, %v949_v11 }
 0x6e9   :  { %v955_v13 = vmul.f32 0.70710677, %v950_v12  ;;  %v953_v45 = vmul.f32 0.5, %v950_v12 }
 0x6eb   :  { %v957_v14 = vand.u32 2147483647, %v955_v13  ;;  %vm1023_vm12 = vcmp.ge.f32.partialorder %v955_v13, 0.0 }
 0x6ed   :  { %v959_v15 = vmul.f32 0.3275911, %v957_v14  ;;  %v1011_v27 = vsub.f32 0.0, %v957_v14 }
 0x6ef   :  { %v961_v16 = vadd.f32 1.0, %v959_v15  ;;  %v1013_v30 = vmul.f32 %v1011_v27, %v957_v14 }
 0x6f1   :  { %1207 = vrcp.f32 %v961_v16  ;;  %v988_v10 = vand.u32 2147483648, %v961_v16  ;;  %v986_v23 = vand.u32 2147483647, %v961_v16  ;;  %vm982_vm9 = vweird.f32 %v961_v16 }
 0x6f2   :  { %v1016_v33 = vmul.f32 1.442695, %v1013_v30 }
 0x6f3   :  { %v989_v25 = vor.u32 1.1754944e-38, %v988_v10  ;;  %vm987_vm11 = vcmp.eq.f32.partialorder %v986_v23, 8.507059e+37 }
 0x6f4   :  { %1209 = vpow2.f32 %v1016_v33 }
 0x6f7   :  { %v1208_v17 = vpop.eup %1207 }
 0x6f8   :  { %v978_v19 = vmul.f32 %v1208_v17, %v961_v16  ;;  %vm983_vm8 = vweird.f32 %v1208_v17 }
 0x6f9   :  { %vm984_vm10 = vmor %vm982_vm9, %vm983_vm8 }
 0x6fa   :  { %v979_v20 = vsub.f32 1.0, %v978_v19  ;;  %v1210_v41 = vpop.eup %1209 }
 0x6fc   :  { %v980_v21 = vmul.f32 %v1208_v17, %v979_v20 }
 0x6fe   :  { %v981_v24 = vadd.f32 %v1208_v17, %v980_v21 }
 0x700   :  { %v985_v26 = vsel %vm984_vm10, %v1208_v17, %v981_v24 }
 0x701   :  { %v990_v22 = vsel %vm987_vm11, %v989_v25, %v985_v26 }
 0x702   :  { %v993_v28 = vmul.f32 1.0614054, %v990_v22 }
 0x704   :  { %v995_v29 = vadd.f32 -1.4531521, %v993_v28 }
 0x706   :  { %v997_v31 = vmul.f32 %v995_v29, %v990_v22 }
 0x708   :  { %v999_v32 = vadd.f32 1.4214138, %v997_v31 }
 0x70a   :  { %v1001_v34 = vmul.f32 %v999_v32, %v990_v22 }
 0x70c   :  { %v1003_v35 = vadd.f32 -0.28449672, %v1001_v34 }
 0x70e   :  { %v1005_v37 = vmul.f32 %v1003_v35, %v990_v22 }
 0x710   :  { %v1007_v38 = vadd.f32 0.2548296, %v1005_v37 }
 0x712   :  { %v1009_v39 = vmul.f32 %v1007_v38, %v990_v22 }
 0x714   :  { %v1019_v42 = vmul.f32 %v1210_v41, %v1009_v39 }
 0x716   :  { %v1021_v43 = vsub.f32 1.0, %v1019_v42 }
 0x718   :  { %v1025_v0 = vsub.f32 0.0, %v1021_v43 }
 0x71a   :  { %v1027_v44 = vsel %vm1023_vm12, %v1021_v43, %v1025_v0 }
 0x71b   :  { %v1029_v46 = vadd.f32 1.0, %v1027_v44 }
 0x71d   :  { %v1031_v47 = vmul.f32 %v1029_v46, %v953_v45 }
 0x71f   :  { %1071 = vmatmul.f32.gmra.mxu3 %v1031_v47 }
 0x765   :  { %v1069_v48 = vpop.f32.mrf.mxu3 }
 0x766   :  { %v1070_v49 = vadd.f32 %v1160_v2, %v1069_v48 }
 0x768   :  { %v1075_v50 = vadd.f32 %v1070_v49, %v1594_v36 }
 0x76a   :  { %1077 = vst.msk [vmem:[#allocation8] sm:$0xff] %vm104_vm0, %v1075_v50 }
 0x7a2   :  { %v1072_v51 = vpop.f32.mrf.mxu3 }
 0x7a3   :  { %v1073_v52 = vadd.f32 %v1160_v2, %v1072_v51 }
 0x7a5   :  { %v1076_v18 = vadd.f32 %v1073_v52, %v1599_v40 }
 0x7a7   :  { %1078 = vst.msk [vmem:[#allocation8 + $0x8] sm:$0xff] %vm104_vm0, %v1076_v18 }
 0x7a8   :  { %1091 = dma.vmem_to_hbm [thread:$0]  %s1084_s1, 256, %s1086_s23, [#allocation4], %s1315_s21, %s1315_s21, %s1316_s22  }
 0x7a9   :  { %1311 = dma.done.wait [#allocation4], 256  }
 0x7aa   :  { %1312 = vsyncadd [#allocation4], 4294967040 }
 0x7ab   :  { %1096 = vsyncpa [#allocation3], 1 }
 0x7ac   :  { %1097 = vsyncpa [#allocation6], 1 }
 0x7ad   :  { %1098 = vsyncpa [#allocation4], 1 }

</bundles_post_ra>
